<compile_context>
chip_gen: v5e
topology: v5e:2x2
jax: 0.10.0
libtpu: 0.0.40
codegen_flags: <defaults>
</compile_context>

<pallas_src>
import functools

import jax
import jax.numpy as jnp
from jax import lax
from jax.experimental import pallas as pl
from jax.experimental.pallas import tpu as pltpu


def _otter_xattn_kernel(*refs, heads, dim_head, scale, use_mask,
                        only_immediate, latents_per_img, batched_heads):
    if use_mask:
        (x_ref, media_ref, tt_ref, gamma_ref, beta_ref,
         wq_ref, wkv_ref, wout_ref, out_ref) = refs
    else:
        (x_ref, media_ref, gamma_ref, beta_ref,
         wq_ref, wkv_ref, wout_ref, out_ref) = refs
        tt_ref = None

    BB, T, D = x_ref.shape
    _, S, Dv = media_ref.shape
    inner = heads * dim_head
    M = BB * T
    bf16 = jnp.bfloat16
    f32 = jnp.float32

    # ---- LayerNorm (f32 stats, eps=1e-5, biased variance) on the stacked batch.
    x = x_ref[...].astype(f32).reshape(M, D)
    mu = jnp.mean(x, axis=-1, keepdims=True)
    var = jnp.mean((x - mu) ** 2, axis=-1, keepdims=True)
    xn = (x - mu) * lax.rsqrt(var + 1e-5)
    xn = xn * gamma_ref[...] + beta_ref[...]

    # ---- Projections: bf16 MXU operands, f32 accumulation, full-M slabs.
    q2d = jnp.dot(xn.astype(bf16), wq_ref[...],
                  preferred_element_type=f32) * scale            # (M, inner)
    m2d = media_ref[...].reshape(BB * S, Dv)                     # bf16
    kv = jnp.dot(m2d, wkv_ref[...], preferred_element_type=f32)  # (BB*S, 2*inner)
    k2d = kv[:, :inner]          # 128-aligned lane slices
    v2d = kv[:, inner:]

    if use_mask:
        # Key-position index, built in-kernel (replaces the (B,T,S) f32 bias).
        s_pos = lax.broadcasted_iota(jnp.int32, (T, S), 1).astype(f32)
        n_f = float(latents_per_img)

    for b in range(BB):
        rq = slice(b * T, (b + 1) * T)
        rk = slice(b * S, (b + 1) * S)

        if use_mask:
            tt_b = tt_ref[b]                    # (T, 1) f32 text_time
            upper = tt_b * n_f                  # end (exclusive) of allowed span
            if only_immediate:
                allowed = (s_pos >= upper - n_f) & (s_pos < upper)   # (T, S)
            else:
                allowed = s_pos < upper

        if batched_heads:
            # One lane->head-major relayout per operand, then head-batched dots.
            qh = pltpu.einshape("t(hd)->htd", q2d[rq], h=heads, d=dim_head)
            kh = pltpu.einshape("s(hd)->hsd", k2d[rk], h=heads, d=dim_head)
            vh = pltpu.einshape("s(hd)->hsd", v2d[rk], h=heads, d=dim_head)
            qh = qh.astype(bf16)
            kh = kh.astype(bf16)
            vh = vh.astype(bf16)

            sim = jnp.einsum('htd,hsd->hts', qh, kh,
                             preferred_element_type=f32)          # (h, T, S)
            if use_mask:
                sim = jnp.where(allowed[None], sim, -1e30)
            sim = sim - jnp.max(sim, axis=-1, keepdims=True)
            p = jnp.exp(sim)
            inv = pl.reciprocal(jnp.sum(p, axis=-1, keepdims=True), approx=True)
            if use_mask and only_immediate:
                inv = inv * (tt_b != 0).astype(f32)[None]          # zero tt==0
            p = (p * inv).astype(bf16)
            oh = jnp.einsum('hts,hsd->htd', p, vh,
                            preferred_element_type=f32)            # (h, T, dh)
            head_out = [oh[h] for h in range(heads)]
        else:
            # Conservative fallback: per-head 2-D dots on lane slices
            # (known-good lowering path).
            q_bf = q2d[rq].astype(bf16)
            k_bf = k2d[rk].astype(bf16)
            v_bf = v2d[rk].astype(bf16)
            keep_b = None
            if use_mask and only_immediate:
                keep_b = (tt_b != 0).astype(f32)                   # (T, 1)
            head_out = []
            for h in range(heads):
                sl = slice(h * dim_head, (h + 1) * dim_head)
                sim = lax.dot_general(q_bf[:, sl], k_bf[:, sl],
                                      (((1,), (1,)), ((), ())),
                                      preferred_element_type=f32)  # (T, S)
                if use_mask:
                    sim = jnp.where(allowed, sim, -1e30)
                sim = sim - jnp.max(sim, axis=-1, keepdims=True)
                p = jnp.exp(sim)
                inv = pl.reciprocal(jnp.sum(p, axis=-1, keepdims=True),
                                    approx=True)
                if keep_b is not None:
                    inv = inv * keep_b
                p = (p * inv).astype(bf16)
                head_out.append(jnp.dot(p, v_bf[:, sl],
                                        preferred_element_type=f32))

        # ---- Output projection: per-head accumulation against Wout
        # reshaped (heads, dim_head, D).  No VMEM scratch round-trip, no
        # masked 64-lane stores, leading-dim-only indexing.
        out_b = jnp.dot(head_out[0].astype(bf16), wout_ref[0],
                        preferred_element_type=f32)
        for h in range(1, heads):
            out_b = out_b + jnp.dot(head_out[h].astype(bf16), wout_ref[h],
                                    preferred_element_type=f32)
        out_ref[b] = out_b.astype(out_ref.dtype)


def otter_masked_cross_attention(x, media, media_locations=None,
                                 attend_previous=True, *, params,
                                 heads, dim_head,
                                 only_attend_immediate_media=True,
                                 block_b=None):
    gamma, beta, wq, wkv, wout = params
    B, T, D = x.shape
    _, T_img, n, Dv = media.shape
    S = T_img * n
    inner = heads * dim_head

    # bf16 activations & weights in HBM (halves DMA, bf16 MXU operands).
    x_bf = x.astype(jnp.bfloat16)
    media_flat = media.reshape(B, S, Dv).astype(jnp.bfloat16)
    wq_b = wq.astype(jnp.bfloat16)
    wkv_b = wkv.astype(jnp.bfloat16)
    # Wout head-blocked so the kernel can index heads on the leading dim.
    wout_b = wout.reshape(heads, dim_head, D).astype(jnp.bfloat16)

    use_mask = media_locations is not None
    tt_f = None
    if use_mask:
        tt = jnp.cumsum(media_locations.astype(jnp.int32), axis=-1)   # (B, T)
        if not attend_previous:
            tt = tt + (~media_locations).astype(jnp.int32)
            counts = jnp.sum(media_locations.astype(jnp.int32), axis=-1,
                             keepdims=True)
            tt = jnp.where(tt > counts, 0, tt)
        # Tiny (B, T, 1) f32 text_time stream; the (B,T,S) mask is rebuilt
        # in-kernel, removing the dominant HBM->VMEM stream at large T*S.
        tt_f = tt.astype(jnp.float32)[..., None]

    # Stack batch elements per grid step to fill MXU rows, but keep the grid
    # length >= 2 so both v7x TensorCores get work and prefetch overlaps.
    if block_b is None:
        block_b = 1
        bb_cap = max(1, B // 2)
        for d in range(1, B + 1):
            if B % d == 0 and d <= bb_cap and d * T <= 256:
                block_b = d
    assert B % block_b == 0, "block_b must divide batch"
    BB = block_b

    def nbytes(shape, dtype):
        sz = 1
        for s in shape:
            sz *= int(s)
        return sz * jnp.dtype(dtype).itemsize

    def make_call(batched_heads, single_buffer_weights):
        kernel = functools.partial(
            _otter_xattn_kernel, heads=heads, dim_head=dim_head,
            scale=dim_head ** (-0.5), use_mask=use_mask,
            only_immediate=only_attend_immediate_media,
            latents_per_img=n, batched_heads=batched_heads)

        def const_spec(shape):
            idx = lambda b: (0,) * len(shape)
            if single_buffer_weights:
                # Grid-invariant blocks: one VMEM buffer instead of two.
                return pl.BlockSpec(shape, idx, pipeline_mode=pl.Buffered(1))
            return pl.BlockSpec(shape, idx)

        in_specs = [
            pl.BlockSpec((BB, T, D), lambda b: (b, 0, 0)),      # x (bf16)
            pl.BlockSpec((BB, S, Dv), lambda b: (b, 0, 0)),     # media (bf16)
        ]
        if use_mask:
            in_specs.append(pl.BlockSpec((BB, T, 1), lambda b: (b, 0, 0)))  # tt
        in_specs += [
            const_spec((1, D)),                                 # ln gamma
            const_spec((1, D)),                                 # ln beta
            const_spec((D, inner)),                             # Wq   (bf16)
            const_spec((Dv, 2 * inner)),                        # Wkv  (bf16)
            const_spec((heads, dim_head, D)),                   # Wout (bf16)
        ]

        # VMEM budget derived from actual block sizes (+ intermediate headroom).
        blk = (nbytes((BB, T, D), jnp.bfloat16)
               + nbytes((BB, S, Dv), jnp.bfloat16)
               + nbytes((BB, T, 1), jnp.float32)
               + 2 * nbytes((1, D), jnp.float32)
               + nbytes((D, inner), jnp.bfloat16)
               + nbytes((Dv, 2 * inner), jnp.bfloat16)
               + nbytes((heads, dim_head, D), jnp.bfloat16)
               + nbytes((BB, T, D), jnp.float32))
        interm = (2 * nbytes((BB * T, D), jnp.float32)
                  + 2 * nbytes((BB * T, inner), jnp.float32)
                  + 2 * nbytes((BB * S, 2 * inner), jnp.float32)
                  + 4 * nbytes((heads, T, S), jnp.float32))
        vmem_limit = int(min(128 * 1024 * 1024,
                             max(32 * 1024 * 1024,
                                 2 * blk + interm + 4 * 1024 * 1024)))

        grid_spec = pltpu.PrefetchScalarGridSpec(
            num_scalar_prefetch=0,
            grid=(B // BB,),
            in_specs=in_specs,
            out_specs=pl.BlockSpec((BB, T, D), lambda b: (b, 0, 0)),
        )
        return pl.pallas_call(
            kernel,
            out_shape=jax.ShapeDtypeStruct((B, T, D), jnp.float32),
            grid_spec=grid_spec,
            compiler_params=pltpu.CompilerParams(
                dimension_semantics=("parallel",),
                vmem_limit_bytes=vmem_limit),
        )

    args = (x_bf, media_flat) + ((tt_f,) if use_mask else ()) + (
        gamma, beta, wq_b, wkv_b, wout_b)

    # Primary: head-batched dots + single-buffered weights.  If the local
    # Pallas/Mosaic build rejects any newer construct (einshape grouping,
    # batched dot, pipeline_mode), fall back to configurations that lower
    # everywhere.
    last_err = None
    for batched, single_buf in ((True, True), (True, False), (False, False)):
        try:
            return make_call(batched, single_buf)(*args)
        except Exception as e:  # noqa: BLE001 - fall back on lowering failures
            last_err = e
    raise last_err


def reference(x, media, media_locations, attend_previous, params,
              heads, dim_head, only_attend_immediate_media=True):
    """Pure-JAX mirror of the PyTorch forward with matching bf16 matmul casts."""
    gamma, beta, wq, wkv, wout = params
    B, T, D = x.shape
    _, T_img, n, Dv = media.shape
    inner = heads * dim_head
    bf = jnp.bfloat16

    mu = x.mean(-1, keepdims=True)
    var = ((x - mu) ** 2).mean(-1, keepdims=True)
    xn = (x - mu) * lax.rsqrt(var + 1e-5) * gamma[0] + beta[0]

    q = jnp.dot(xn.reshape(B * T, D).astype(bf), wq.astype(bf),
                preferred_element_type=jnp.float32).reshape(B, T, inner)
    mflat = media.reshape(B, T_img * n, Dv).astype(bf)
    kv = jnp.einsum('bsd,df->bsf', mflat, wkv.astype(bf),
                    preferred_element_type=jnp.float32)
    k, v = kv[..., :inner], kv[..., inner:]

    def split(a):
        return a.reshape(B, -1, heads, dim_head).transpose(0, 2, 1, 3)

    q = split(q * dim_head ** (-0.5)).astype(bf)
    k = split(k).astype(bf)
    v = split(v).astype(bf)
    sim = jnp.einsum('bhid,bhjd->bhij', q, k,
                     preferred_element_type=jnp.float32)

    if media_locations is not None:
        tt = jnp.cumsum(media_locations.astype(jnp.int32), -1)
        if not attend_previous:
            tt = tt + (~media_locations).astype(jnp.int32)
            counts = jnp.sum(media_locations.astype(jnp.int32), -1,
                             keepdims=True)
            tt = jnp.where(tt > counts, 0, tt)
        mt = jnp.repeat(jnp.arange(T_img, dtype=jnp.int32) + 1, n)
        cmp = (lambda a, b: a == b) if only_attend_immediate_media \
            else (lambda a, b: a >= b)
        mask = cmp(tt[:, None, :, None], mt[None, None, None, :])
        sim = jnp.where(mask, sim, -jnp.finfo(jnp.float32).max)

    sim = sim - sim.max(-1, keepdims=True)
    attn = jnp.exp(sim)
    attn = attn / attn.sum(-1, keepdims=True)
    if media_locations is not None and only_attend_immediate_media:
        attn = jnp.where((tt == 0)[:, None, :, None], 0.0, attn)

    out = jnp.einsum('bhij,bhjd->bhid', attn.astype(bf), v,
                     preferred_element_type=jnp.float32)
    out = out.transpose(0, 2, 1, 3).reshape(B, T, inner)
    return jnp.dot(out.reshape(B * T, inner).astype(bf), wout.astype(bf),
                   preferred_element_type=jnp.float32).reshape(B, T, D)


if __name__ == "__main__":
    # Small, lane-friendly shapes consistent with the module's forward
    # (n latents per image -> S = T_img * n = 128 keys).
    B, T_txt, dim = 2, 16, 128
    T_img, n_lat, dim_visual = 2, 64, 128
    heads, dim_head = 4, 64
    inner = heads * dim_head

    key = jax.random.PRNGKey(0)
    kx, km, kg, kb, kq, kkv, ko = jax.random.split(key, 7)

    x = jax.random.normal(kx, (B, T_txt, dim), jnp.float32)
    media = jax.random.normal(km, (B, T_img, n_lat, dim_visual), jnp.float32)
    # Media tokens at text positions 2 and 8 -> rows 0-1 have no preceding
    # media (exercises the tt==0 zeroing path).
    media_locations = jnp.zeros((B, T_txt), jnp.bool_)
    media_locations = media_locations.at[:, 2].set(True).at[:, 8].set(True)

    # Synthetic parameters (torch: nn.LayerNorm(dim), to_q: dim->inner,
    # to_kv: dim_visual->2*inner, to_out: inner->dim; all bias-free).
    gamma = 1.0 + 0.1 * jax.random.normal(kg, (1, dim), jnp.float32)
    beta = 0.1 * jax.random.normal(kb, (1, dim), jnp.float32)
    wq = 0.02 * jax.random.normal(kq, (dim, inner), jnp.float32)
    wkv = 0.02 * jax.random.normal(kkv, (dim_visual, 2 * inner), jnp.float32)
    wout = 0.02 * jax.random.normal(ko, (inner, dim), jnp.float32)
    params = (gamma, beta, wq, wkv, wout)

    out = otter_masked_cross_attention(
        x, media, media_locations, attend_previous=True, params=params,
        heads=heads, dim_head=dim_head, only_attend_immediate_media=True)
    out = jax.block_until_ready(out)

    ref = reference(x, media, media_locations, True, params,
                    heads, dim_head, only_attend_immediate_media=True)
    assert out.shape == (B, T_txt, dim)
    max_err = float(jnp.max(jnp.abs(out - ref)))
    assert max_err < 2e-2, max_err

    print("KERNEL_OK")
</pallas_src>

<mosaic_0001>
module attributes {stable_mosaic.version = 11 : i64} {
  func.func @_otter_xattn_kernel(%arg0: i32, %arg1: memref<1x16x128xbf16, #tpu.memory_space<vmem>>, %arg2: memref<1x128x128xbf16, #tpu.memory_space<vmem>>, %arg3: memref<1x16x1xf32, #tpu.memory_space<vmem>>, %arg4: memref<1x128xf32, #tpu.memory_space<vmem>>, %arg5: memref<1x128xf32, #tpu.memory_space<vmem>>, %arg6: memref<128x256xbf16, #tpu.memory_space<vmem>>, %arg7: memref<128x512xbf16, #tpu.memory_space<vmem>>, %arg8: memref<4x64x128xbf16, #tpu.memory_space<vmem>>, %arg9: memref<1x16x128xf32, #tpu.memory_space<vmem>>) attributes {dimension_semantics = [#tpu.dimension_semantics<parallel>], iteration_bounds = array<i64: 2>, scalar_prefetch = 0 : i64, scratch_operands = 0 : i64, tpu.core_type = #tpu.core_type<tc>, window_params = [{transform_indices = @transform_0, window_bounds = array<i64: 1, 16, 128>}, {transform_indices = @transform_1, window_bounds = array<i64: 1, 128, 128>}, {transform_indices = @transform_2, window_bounds = array<i64: 1, 16, 1>}, {pipeline_mode = #tpu.pipeline_mode<synchronous>, transform_indices = @transform_3, window_bounds = array<i64: 1, 128>}, {pipeline_mode = #tpu.pipeline_mode<synchronous>, transform_indices = @transform_4, window_bounds = array<i64: 1, 128>}, {pipeline_mode = #tpu.pipeline_mode<synchronous>, transform_indices = @transform_5, window_bounds = array<i64: 128, 256>}, {pipeline_mode = #tpu.pipeline_mode<synchronous>, transform_indices = @transform_6, window_bounds = array<i64: 128, 512>}, {pipeline_mode = #tpu.pipeline_mode<synchronous>, transform_indices = @transform_7, window_bounds = array<i64: 4, 64, 128>}, {transform_indices = @transform_8, window_bounds = array<i64: 1, 16, 128>}]} {
    %c0 = arith.constant 0 : index
    %c0_0 = arith.constant 0 : index
    %c0_1 = arith.constant 0 : index
    %0 = vector.load %arg1[%c0, %c0_0, %c0_1] : memref<1x16x128xbf16, #tpu.memory_space<vmem>>, vector<1x16x128xbf16>
    %1 = arith.extf %0 : vector<1x16x128xbf16> to vector<1x16x128xf32>
    %2 = vector.shape_cast %1 : vector<1x16x128xf32> to vector<16x128xf32>
    %cst = arith.constant dense<0.000000e+00> : vector<16xf32>
    %3 = vector.multi_reduction <add>, %2, %cst [1] : vector<16x128xf32> to vector<16xf32>
    %4 = vector.shape_cast %3 : vector<16xf32> to vector<16x1xf32>
    %cst_2 = arith.constant 1.280000e+02 : f32
    %5 = vector.broadcast %cst_2 : f32 to vector<16x1xf32>
    %6 = arith.divf %4, %5 : vector<16x1xf32>
    %7 = vector.broadcast %6 : vector<16x1xf32> to vector<16x128xf32>
    %8 = arith.subf %2, %7 : vector<16x128xf32>
    %9 = arith.mulf %8, %8 : vector<16x128xf32>
    %cst_3 = arith.constant dense<0.000000e+00> : vector<16xf32>
    %10 = vector.multi_reduction <add>, %9, %cst_3 [1] : vector<16x128xf32> to vector<16xf32>
    %11 = vector.shape_cast %10 : vector<16xf32> to vector<16x1xf32>
    %cst_4 = arith.constant 1.280000e+02 : f32
    %12 = vector.broadcast %cst_4 : f32 to vector<16x1xf32>
    %13 = arith.divf %11, %12 : vector<16x1xf32>
    %14 = vector.broadcast %6 : vector<16x1xf32> to vector<16x128xf32>
    %15 = arith.subf %2, %14 : vector<16x128xf32>
    %cst_5 = arith.constant 9.99999974E-6 : f32
    %16 = vector.broadcast %cst_5 : f32 to vector<16x1xf32>
    %17 = arith.addf %13, %16 : vector<16x1xf32>
    %18 = math.rsqrt %17 : vector<16x1xf32>
    %19 = vector.broadcast %18 : vector<16x1xf32> to vector<16x128xf32>
    %20 = arith.mulf %15, %19 : vector<16x128xf32>
    %c0_6 = arith.constant 0 : index
    %c0_7 = arith.constant 0 : index
    %21 = vector.load %arg4[%c0_6, %c0_7] : memref<1x128xf32, #tpu.memory_space<vmem>>, vector<1x128xf32>
    %22 = vector.broadcast %21 : vector<1x128xf32> to vector<16x128xf32>
    %23 = arith.mulf %20, %22 : vector<16x128xf32>
    %c0_8 = arith.constant 0 : index
    %c0_9 = arith.constant 0 : index
    %24 = vector.load %arg5[%c0_8, %c0_9] : memref<1x128xf32, #tpu.memory_space<vmem>>, vector<1x128xf32>
    %25 = vector.broadcast %24 : vector<1x128xf32> to vector<16x128xf32>
    %26 = arith.addf %23, %25 : vector<16x128xf32>
    %27 = arith.truncf %26 : vector<16x128xf32> to vector<16x128xbf16>
    %c0_10 = arith.constant 0 : index
    %c0_11 = arith.constant 0 : index
    %28 = vector.load %arg6[%c0_10, %c0_11] : memref<128x256xbf16, #tpu.memory_space<vmem>>, vector<128x256xbf16>
    %cst_12 = arith.constant dense<0.000000e+00> : vector<16x256xf32>
    %29 = tpu.matmul %27, %28, %cst_12 {dimension_numbers = #tpu.dot_dimension_numbers<[1], [0], [0], [1], [0, 0, 1, 1], [], []>} : vector<16x128xbf16>, vector<128x256xbf16>, vector<16x256xf32> -> vector<16x256xf32>
    %cst_13 = arith.constant 1.250000e-01 : f32
    %30 = vector.broadcast %cst_13 : f32 to vector<16x256xf32>
    %31 = arith.mulf %29, %30 : vector<16x256xf32>
    %c0_14 = arith.constant 0 : index
    %c0_15 = arith.constant 0 : index
    %c0_16 = arith.constant 0 : index
    %32 = vector.load %arg2[%c0_14, %c0_15, %c0_16] : memref<1x128x128xbf16, #tpu.memory_space<vmem>>, vector<1x128x128xbf16>
    %33 = vector.shape_cast %32 : vector<1x128x128xbf16> to vector<128x128xbf16>
    %c0_17 = arith.constant 0 : index
    %c0_18 = arith.constant 0 : index
    %34 = vector.load %arg7[%c0_17, %c0_18] : memref<128x512xbf16, #tpu.memory_space<vmem>>, vector<128x512xbf16>
    %cst_19 = arith.constant dense<0.000000e+00> : vector<128x512xf32>
    %35 = tpu.matmul %33, %34, %cst_19 {dimension_numbers = #tpu.dot_dimension_numbers<[1], [0], [0], [1], [0, 0, 1, 1], [], []>} : vector<128x128xbf16>, vector<128x512xbf16>, vector<128x512xf32> -> vector<128x512xf32>
    %36 = vector.extract_strided_slice %35 {offsets = [0, 0], sizes = [128, 256], strides = [1, 1]} : vector<128x512xf32> to vector<128x256xf32>
    %37 = vector.extract_strided_slice %35 {offsets = [0, 256], sizes = [128, 256], strides = [1, 1]} : vector<128x512xf32> to vector<128x256xf32>
    %38 = tpu.iota {dimensions = array<i32: 1>} : vector<16x128xi32>
    %39 = arith.sitofp %38 : vector<16x128xi32> to vector<16x128xf32>
    %c0_20 = arith.constant 0 : index
    %c0_21 = arith.constant 0 : index
    %c0_22 = arith.constant 0 : index
    %40 = vector.load %arg3[%c0_20, %c0_21, %c0_22] : memref<1x16x1xf32, #tpu.memory_space<vmem>>, vector<1x16x1xf32>
    %41 = vector.shape_cast %40 : vector<1x16x1xf32> to vector<16x1xf32>
    %cst_23 = arith.constant 6.400000e+01 : f32
    %42 = vector.broadcast %cst_23 : f32 to vector<16x1xf32>
    %43 = arith.mulf %41, %42 : vector<16x1xf32>
    %cst_24 = arith.constant 6.400000e+01 : f32
    %44 = vector.broadcast %cst_24 : f32 to vector<16x1xf32>
    %45 = arith.subf %43, %44 : vector<16x1xf32>
    %46 = vector.broadcast %45 : vector<16x1xf32> to vector<16x128xf32>
    %47 = arith.cmpf oge, %39, %46 : vector<16x128xf32>
    %48 = vector.broadcast %43 : vector<16x1xf32> to vector<16x128xf32>
    %49 = arith.cmpf olt, %39, %48 : vector<16x128xf32>
    %50 = arith.andi %47, %49 : vector<16x128xi1>
    %51 = arith.truncf %31 : vector<16x256xf32> to vector<16x256xbf16>
    %52 = arith.truncf %36 : vector<128x256xf32> to vector<128x256xbf16>
    %53 = arith.truncf %37 : vector<128x256xf32> to vector<128x256xbf16>
    %cst_25 = arith.constant 0.000000e+00 : f32
    %54 = vector.broadcast %cst_25 : f32 to vector<16x1xf32>
    %55 = arith.cmpf one, %41, %54 : vector<16x1xf32>
    %56 = arith.extui %55 : vector<16x1xi1> to vector<16x1xi32>
    %57 = arith.sitofp %56 : vector<16x1xi32> to vector<16x1xf32>
    %58 = vector.extract_strided_slice %51 {offsets = [0, 0], sizes = [16, 64], strides = [1, 1]} : vector<16x256xbf16> to vector<16x64xbf16>
    %59 = vector.extract_strided_slice %52 {offsets = [0, 0], sizes = [128, 64], strides = [1, 1]} : vector<128x256xbf16> to vector<128x64xbf16>
    %cst_26 = arith.constant dense<0.000000e+00> : vector<16x128xf32>
    %60 = tpu.matmul %58, %59, %cst_26 {dimension_numbers = #tpu.dot_dimension_numbers<[1], [1], [0], [0], [0, 0, 1, 0], [], []>} : vector<16x64xbf16>, vector<128x64xbf16>, vector<16x128xf32> -> vector<16x128xf32>
    %cst_27 = arith.constant -1.000000e+30 : f32
    %61 = vector.broadcast %cst_27 : f32 to vector<16x128xf32>
    %62 = arith.select %50, %60, %61 : vector<16x128xi1>, vector<16x128xf32>
    %cst_28 = arith.constant dense<0xFF800000> : vector<16xf32>
    %63 = vector.multi_reduction <maximumf>, %62, %cst_28 [1] : vector<16x128xf32> to vector<16xf32>
    %64 = vector.shape_cast %63 : vector<16xf32> to vector<16x1xf32>
    %65 = vector.broadcast %64 : vector<16x1xf32> to vector<16x128xf32>
    %66 = arith.subf %62, %65 : vector<16x128xf32>
    %67 = math.exp %66 : vector<16x128xf32>
    %cst_29 = arith.constant dense<0.000000e+00> : vector<16xf32>
    %68 = vector.multi_reduction <add>, %67, %cst_29 [1] : vector<16x128xf32> to vector<16xf32>
    %69 = vector.shape_cast %68 : vector<16xf32> to vector<16x1xf32>
    %70 = tpu.reciprocal %69 {approx = true} : vector<16x1xf32> -> vector<16x1xf32>
    %71 = arith.mulf %70, %57 : vector<16x1xf32>
    %72 = vector.broadcast %71 : vector<16x1xf32> to vector<16x128xf32>
    %73 = arith.mulf %67, %72 : vector<16x128xf32>
    %74 = arith.truncf %73 : vector<16x128xf32> to vector<16x128xbf16>
    %75 = vector.extract_strided_slice %53 {offsets = [0, 0], sizes = [128, 64], strides = [1, 1]} : vector<128x256xbf16> to vector<128x64xbf16>
    %cst_30 = arith.constant dense<0.000000e+00> : vector<16x64xf32>
    %76 = tpu.matmul %74, %75, %cst_30 {dimension_numbers = #tpu.dot_dimension_numbers<[1], [0], [0], [1], [0, 0, 1, 1], [], []>} : vector<16x128xbf16>, vector<128x64xbf16>, vector<16x64xf32> -> vector<16x64xf32>
    %77 = vector.extract_strided_slice %51 {offsets = [0, 64], sizes = [16, 64], strides = [1, 1]} : vector<16x256xbf16> to vector<16x64xbf16>
    %78 = vector.extract_strided_slice %52 {offsets = [0, 64], sizes = [128, 64], strides = [1, 1]} : vector<128x256xbf16> to vector<128x64xbf16>
    %cst_31 = arith.constant dense<0.000000e+00> : vector<16x128xf32>
    %79 = tpu.matmul %77, %78, %cst_31 {dimension_numbers = #tpu.dot_dimension_numbers<[1], [1], [0], [0], [0, 0, 1, 0], [], []>} : vector<16x64xbf16>, vector<128x64xbf16>, vector<16x128xf32> -> vector<16x128xf32>
    %cst_32 = arith.constant -1.000000e+30 : f32
    %80 = vector.broadcast %cst_32 : f32 to vector<16x128xf32>
    %81 = arith.select %50, %79, %80 : vector<16x128xi1>, vector<16x128xf32>
    %cst_33 = arith.constant dense<0xFF800000> : vector<16xf32>
    %82 = vector.multi_reduction <maximumf>, %81, %cst_33 [1] : vector<16x128xf32> to vector<16xf32>
    %83 = vector.shape_cast %82 : vector<16xf32> to vector<16x1xf32>
    %84 = vector.broadcast %83 : vector<16x1xf32> to vector<16x128xf32>
    %85 = arith.subf %81, %84 : vector<16x128xf32>
    %86 = math.exp %85 : vector<16x128xf32>
    %cst_34 = arith.constant dense<0.000000e+00> : vector<16xf32>
    %87 = vector.multi_reduction <add>, %86, %cst_34 [1] : vector<16x128xf32> to vector<16xf32>
    %88 = vector.shape_cast %87 : vector<16xf32> to vector<16x1xf32>
    %89 = tpu.reciprocal %88 {approx = true} : vector<16x1xf32> -> vector<16x1xf32>
    %90 = arith.mulf %89, %57 : vector<16x1xf32>
    %91 = vector.broadcast %90 : vector<16x1xf32> to vector<16x128xf32>
    %92 = arith.mulf %86, %91 : vector<16x128xf32>
    %93 = arith.truncf %92 : vector<16x128xf32> to vector<16x128xbf16>
    %94 = vector.extract_strided_slice %53 {offsets = [0, 64], sizes = [128, 64], strides = [1, 1]} : vector<128x256xbf16> to vector<128x64xbf16>
    %cst_35 = arith.constant dense<0.000000e+00> : vector<16x64xf32>
    %95 = tpu.matmul %93, %94, %cst_35 {dimension_numbers = #tpu.dot_dimension_numbers<[1], [0], [0], [1], [0, 0, 1, 1], [], []>} : vector<16x128xbf16>, vector<128x64xbf16>, vector<16x64xf32> -> vector<16x64xf32>
    %96 = vector.extract_strided_slice %51 {offsets = [0, 128], sizes = [16, 64], strides = [1, 1]} : vector<16x256xbf16> to vector<16x64xbf16>
    %97 = vector.extract_strided_slice %52 {offsets = [0, 128], sizes = [128, 64], strides = [1, 1]} : vector<128x256xbf16> to vector<128x64xbf16>
    %cst_36 = arith.constant dense<0.000000e+00> : vector<16x128xf32>
    %98 = tpu.matmul %96, %97, %cst_36 {dimension_numbers = #tpu.dot_dimension_numbers<[1], [1], [0], [0], [0, 0, 1, 0], [], []>} : vector<16x64xbf16>, vector<128x64xbf16>, vector<16x128xf32> -> vector<16x128xf32>
    %cst_37 = arith.constant -1.000000e+30 : f32
    %99 = vector.broadcast %cst_37 : f32 to vector<16x128xf32>
    %100 = arith.select %50, %98, %99 : vector<16x128xi1>, vector<16x128xf32>
    %cst_38 = arith.constant dense<0xFF800000> : vector<16xf32>
    %101 = vector.multi_reduction <maximumf>, %100, %cst_38 [1] : vector<16x128xf32> to vector<16xf32>
    %102 = vector.shape_cast %101 : vector<16xf32> to vector<16x1xf32>
    %103 = vector.broadcast %102 : vector<16x1xf32> to vector<16x128xf32>
    %104 = arith.subf %100, %103 : vector<16x128xf32>
    %105 = math.exp %104 : vector<16x128xf32>
    %cst_39 = arith.constant dense<0.000000e+00> : vector<16xf32>
    %106 = vector.multi_reduction <add>, %105, %cst_39 [1] : vector<16x128xf32> to vector<16xf32>
    %107 = vector.shape_cast %106 : vector<16xf32> to vector<16x1xf32>
    %108 = tpu.reciprocal %107 {approx = true} : vector<16x1xf32> -> vector<16x1xf32>
    %109 = arith.mulf %108, %57 : vector<16x1xf32>
    %110 = vector.broadcast %109 : vector<16x1xf32> to vector<16x128xf32>
    %111 = arith.mulf %105, %110 : vector<16x128xf32>
    %112 = arith.truncf %111 : vector<16x128xf32> to vector<16x128xbf16>
    %113 = vector.extract_strided_slice %53 {offsets = [0, 128], sizes = [128, 64], strides = [1, 1]} : vector<128x256xbf16> to vector<128x64xbf16>
    %cst_40 = arith.constant dense<0.000000e+00> : vector<16x64xf32>
    %114 = tpu.matmul %112, %113, %cst_40 {dimension_numbers = #tpu.dot_dimension_numbers<[1], [0], [0], [1], [0, 0, 1, 1], [], []>} : vector<16x128xbf16>, vector<128x64xbf16>, vector<16x64xf32> -> vector<16x64xf32>
    %115 = vector.extract_strided_slice %51 {offsets = [0, 192], sizes = [16, 64], strides = [1, 1]} : vector<16x256xbf16> to vector<16x64xbf16>
    %116 = vector.extract_strided_slice %52 {offsets = [0, 192], sizes = [128, 64], strides = [1, 1]} : vector<128x256xbf16> to vector<128x64xbf16>
    %cst_41 = arith.constant dense<0.000000e+00> : vector<16x128xf32>
    %117 = tpu.matmul %115, %116, %cst_41 {dimension_numbers = #tpu.dot_dimension_numbers<[1], [1], [0], [0], [0, 0, 1, 0], [], []>} : vector<16x64xbf16>, vector<128x64xbf16>, vector<16x128xf32> -> vector<16x128xf32>
    %cst_42 = arith.constant -1.000000e+30 : f32
    %118 = vector.broadcast %cst_42 : f32 to vector<16x128xf32>
    %119 = arith.select %50, %117, %118 : vector<16x128xi1>, vector<16x128xf32>
    %cst_43 = arith.constant dense<0xFF800000> : vector<16xf32>
    %120 = vector.multi_reduction <maximumf>, %119, %cst_43 [1] : vector<16x128xf32> to vector<16xf32>
    %121 = vector.shape_cast %120 : vector<16xf32> to vector<16x1xf32>
    %122 = vector.broadcast %121 : vector<16x1xf32> to vector<16x128xf32>
    %123 = arith.subf %119, %122 : vector<16x128xf32>
    %124 = math.exp %123 : vector<16x128xf32>
    %cst_44 = arith.constant dense<0.000000e+00> : vector<16xf32>
    %125 = vector.multi_reduction <add>, %124, %cst_44 [1] : vector<16x128xf32> to vector<16xf32>
    %126 = vector.shape_cast %125 : vector<16xf32> to vector<16x1xf32>
    %127 = tpu.reciprocal %126 {approx = true} : vector<16x1xf32> -> vector<16x1xf32>
    %128 = arith.mulf %127, %57 : vector<16x1xf32>
    %129 = vector.broadcast %128 : vector<16x1xf32> to vector<16x128xf32>
    %130 = arith.mulf %124, %129 : vector<16x128xf32>
    %131 = arith.truncf %130 : vector<16x128xf32> to vector<16x128xbf16>
    %132 = vector.extract_strided_slice %53 {offsets = [0, 192], sizes = [128, 64], strides = [1, 1]} : vector<128x256xbf16> to vector<128x64xbf16>
    %cst_45 = arith.constant dense<0.000000e+00> : vector<16x64xf32>
    %133 = tpu.matmul %131, %132, %cst_45 {dimension_numbers = #tpu.dot_dimension_numbers<[1], [0], [0], [1], [0, 0, 1, 1], [], []>} : vector<16x128xbf16>, vector<128x64xbf16>, vector<16x64xf32> -> vector<16x64xf32>
    %134 = arith.truncf %76 : vector<16x64xf32> to vector<16x64xbf16>
    %c0_46 = arith.constant 0 : index
    %c0_47 = arith.constant 0 : index
    %c0_48 = arith.constant 0 : index
    %135 = vector.load %arg8[%c0_46, %c0_47, %c0_48] : memref<4x64x128xbf16, #tpu.memory_space<vmem>>, vector<1x64x128xbf16>
    %136 = vector.shape_cast %135 : vector<1x64x128xbf16> to vector<64x128xbf16>
    %cst_49 = arith.constant dense<0.000000e+00> : vector<16x128xf32>
    %137 = tpu.matmul %134, %136, %cst_49 {dimension_numbers = #tpu.dot_dimension_numbers<[1], [0], [0], [1], [0, 0, 1, 1], [], []>} : vector<16x64xbf16>, vector<64x128xbf16>, vector<16x128xf32> -> vector<16x128xf32>
    %138 = arith.truncf %95 : vector<16x64xf32> to vector<16x64xbf16>
    %c1 = arith.constant 1 : index
    %c0_50 = arith.constant 0 : index
    %c0_51 = arith.constant 0 : index
    %139 = vector.load %arg8[%c1, %c0_50, %c0_51] : memref<4x64x128xbf16, #tpu.memory_space<vmem>>, vector<1x64x128xbf16>
    %140 = vector.shape_cast %139 : vector<1x64x128xbf16> to vector<64x128xbf16>
    %cst_52 = arith.constant dense<0.000000e+00> : vector<16x128xf32>
    %141 = tpu.matmul %138, %140, %cst_52 {dimension_numbers = #tpu.dot_dimension_numbers<[1], [0], [0], [1], [0, 0, 1, 1], [], []>} : vector<16x64xbf16>, vector<64x128xbf16>, vector<16x128xf32> -> vector<16x128xf32>
    %142 = arith.addf %137, %141 : vector<16x128xf32>
    %143 = arith.truncf %114 : vector<16x64xf32> to vector<16x64xbf16>
    %c2 = arith.constant 2 : index
    %c0_53 = arith.constant 0 : index
    %c0_54 = arith.constant 0 : index
    %144 = vector.load %arg8[%c2, %c0_53, %c0_54] : memref<4x64x128xbf16, #tpu.memory_space<vmem>>, vector<1x64x128xbf16>
    %145 = vector.shape_cast %144 : vector<1x64x128xbf16> to vector<64x128xbf16>
    %cst_55 = arith.constant dense<0.000000e+00> : vector<16x128xf32>
    %146 = tpu.matmul %143, %145, %cst_55 {dimension_numbers = #tpu.dot_dimension_numbers<[1], [0], [0], [1], [0, 0, 1, 1], [], []>} : vector<16x64xbf16>, vector<64x128xbf16>, vector<16x128xf32> -> vector<16x128xf32>
    %147 = arith.addf %142, %146 : vector<16x128xf32>
    %148 = arith.truncf %133 : vector<16x64xf32> to vector<16x64xbf16>
    %c3 = arith.constant 3 : index
    %c0_56 = arith.constant 0 : index
    %c0_57 = arith.constant 0 : index
    %149 = vector.load %arg8[%c3, %c0_56, %c0_57] : memref<4x64x128xbf16, #tpu.memory_space<vmem>>, vector<1x64x128xbf16>
    %150 = vector.shape_cast %149 : vector<1x64x128xbf16> to vector<64x128xbf16>
    %cst_58 = arith.constant dense<0.000000e+00> : vector<16x128xf32>
    %151 = tpu.matmul %148, %150, %cst_58 {dimension_numbers = #tpu.dot_dimension_numbers<[1], [0], [0], [1], [0, 0, 1, 1], [], []>} : vector<16x64xbf16>, vector<64x128xbf16>, vector<16x128xf32> -> vector<16x128xf32>
    %152 = arith.addf %147, %151 : vector<16x128xf32>
    %c0_59 = arith.constant 0 : index
    %c0_60 = arith.constant 0 : index
    %c0_61 = arith.constant 0 : index
    %153 = vector.load %arg9[%c0_59, %c0_60, %c0_61] : memref<1x16x128xf32, #tpu.memory_space<vmem>>, vector<1x16x128xf32>
    %154 = vector.shape_cast %153 : vector<1x16x128xf32> to vector<16x128xf32>
    %155 = vector.shape_cast %152 : vector<16x128xf32> to vector<1x16x128xf32>
    tpu.vector_store %arg9[%c0_59, %c0_60, %c0_61], %155 {strides = array<i32>} : memref<1x16x128xf32, #tpu.memory_space<vmem>>, vector<1x16x128xf32>,
    return
  }
  func.func @transform_0(%arg0: i32) -> (i32, i32, i32) {
    %c0_i32 = arith.constant 0 : i32
    %c0_i32_0 = arith.constant 0 : i32
    %c0_i32_1 = arith.constant 0 : i32
    return %arg0, %c0_i32, %c0_i32_0 : i32, i32, i32
  }
  func.func @transform_1(%arg0: i32) -> (i32, i32, i32) {
    %c0_i32 = arith.constant 0 : i32
    %c0_i32_0 = arith.constant 0 : i32
    %c0_i32_1 = arith.constant 0 : i32
    return %arg0, %c0_i32, %c0_i32_0 : i32, i32, i32
  }
  func.func @transform_2(%arg0: i32) -> (i32, i32, i32) {
    %c0_i32 = arith.constant 0 : i32
    %c0_i32_0 = arith.constant 0 : i32
    %c0_i32_1 = arith.constant 0 : i32
    return %arg0, %c0_i32, %c0_i32_0 : i32, i32, i32
  }
  func.func @transform_3(%arg0: i32) -> (i32, i32) {
    %c0_i32 = arith.constant 0 : i32
    %c0_i32_0 = arith.constant 0 : i32
    %c0_i32_1 = arith.constant 0 : i32
    return %c0_i32, %c0_i32_0 : i32, i32
  }
  func.func @transform_4(%arg0: i32) -> (i32, i32) {
    %c0_i32 = arith.constant 0 : i32
    %c0_i32_0 = arith.constant 0 : i32
    %c0_i32_1 = arith.constant 0 : i32
    return %c0_i32, %c0_i32_0 : i32, i32
  }
  func.func @transform_5(%arg0: i32) -> (i32, i32) {
    %c0_i32 = arith.constant 0 : i32
    %c0_i32_0 = arith.constant 0 : i32
    %c0_i32_1 = arith.constant 0 : i32
    return %c0_i32, %c0_i32_0 : i32, i32
  }
  func.func @transform_6(%arg0: i32) -> (i32, i32) {
    %c0_i32 = arith.constant 0 : i32
    %c0_i32_0 = arith.constant 0 : i32
    %c0_i32_1 = arith.constant 0 : i32
    return %c0_i32, %c0_i32_0 : i32, i32
  }
  func.func @transform_7(%arg0: i32) -> (i32, i32, i32) {
    %c0_i32 = arith.constant 0 : i32
    %c0_i32_0 = arith.constant 0 : i32
    %c0_i32_1 = arith.constant 0 : i32
    %c0_i32_2 = arith.constant 0 : i32
    return %c0_i32, %c0_i32_0, %c0_i32_1 : i32, i32, i32
  }
  func.func @transform_8(%arg0: i32) -> (i32, i32, i32) {
    %c0_i32 = arith.constant 0 : i32
    %c0_i32_0 = arith.constant 0 : i32
    %c0_i32_1 = arith.constant 0 : i32
    return %arg0, %c0_i32, %c0_i32_0 : i32, i32, i32
  }
}

</mosaic_0001>

<bundles_post_ra>
// kernel: tpu_custom_call.1
= control target key start
LH: loop header
LB: loop body
LE: loop exit
PB: predicated region body
PF: predicated region fallthrough
CT: control target
= control target key end

     0   :  { %s3412_s0 = inlined_call_operand.vmem [shape: bf16[2,16,128], index: 0, kind: input, shape index: {}]   ;;  %s3413_s1 = inlined_call_operand.hbm [shape: bf16[2,128,128], index: 1, kind: input, shape index: {}]   ;;  %s3414_s2 = inlined_call_operand.vmem [shape: f32[2,16,1], index: 2, kind: input, shape index: {}]   ;;  %s3415_s3 = inlined_call_operand.vmem [shape: f32[1,128], index: 3, kind: input, shape index: {}]   ;;  %s3416_s4 = inlined_call_operand.vmem [shape: f32[1,128], index: 4, kind: input, shape index: {}]   ;;  %s3417_s5 = inlined_call_operand.hbm [shape: bf16[128,256], index: 5, kind: input, shape index: {}]   ;;  %s3418_s6 = inlined_call_operand.hbm [shape: bf16[128,512], index: 6, kind: input, shape index: {}]   ;;  %s3419_s7 = inlined_call_operand.hbm [shape: bf16[4,64,128], index: 7, kind: input, shape index: {}]   ;;  %s3420_s8 = inlined_call_operand.hbm [shape: f32[2,16,128], index: 8, kind: output, shape index: {}]  }
   0x1   :  { %3423 = sst [smem:[#allocation15_spill]] %s3417_s5 }
   0x2   :  { %3424 = sst [smem:[#allocation16_spill]] %s3418_s6 }
   0x3   :  { %13 = vsyncpa [#allocation3], 0 }
   0x4   :  { %15 = vsyncpa [#allocation3 + $0x1], 0 }
   0x5   :  { %16 = vsyncpa [#allocation6], 0 }
   0x6   :  { %17 = vsyncpa [#allocation9], 0 }
   0x7   :  { %18 = vsyncpa [#allocation4], 0 }
   0x8   :  { %20 = vsyncpa [#allocation4 + $0x1], 0  ;;  %s2868_s27 = smov 0   ;;  %s2870_s28 = smov 0  }
   0x9   :  { %s2872_s29 = smov 0   ;;  %s2874_s30 = smov 0  }
   0xa LB: > { %s2889_s9 = sadd.s32 4294967295, %s2806_s30   ;;  %s2076_s10 = sadd.s32 4294967294, %s2806_s30   ;;  %s2806_s30 = sphi %s2874_s30, %s3443_s30   ;;  %s2802_s29 = sphi %s2872_s29, %s3442_s29   ;;  %s2798_s28 = sphi %s2870_s28, %s3441_s28   ;;  %s2794_s27 = sphi %s2868_s27, %s3440_s27  }
   0xb   : > { %p72_p0 = scmp.ne.s32.totalorder %s2798_s28, %s2794_s27  ;;  %p73_p1 = scmp.eq.s32.totalorder %s2889_s9, 0 }
   0xc   : > { %p227_p2 = scmp.eq.s32.totalorder %s2889_s9, 1  ;;  %p233_p3 = scmp.eq.s32.totalorder %s2076_s10, 1 }
   0xd   : > { %p2898_p4 = por %p73_p1, %p72_p0  ;;  %p2077_p5 = scmp.ge.s32.totalorder %s2806_s30, 1 }
   0xe   : > { %p2903_p6 = por %p233_p3, %p72_p0  ;;  %p240_p7 = scmp.lt.s32.totalorder %s2806_s30, 3 }
   0xf   : > { %s3427_s5 = sld [smem:[#allocation15_spill]]  ;;  %s2808_s17 = smov [#allocation5]  }
  0x10   : > { %p2911_p8 = pnand %p2077_p5, %p240_p7  ;;  %s259_s18 = sshll.u32 %s2808_s17, 4  ;;  %s260_s18 = int_to_ptr.vmem [resolvable:$true] %s259_s18 }
  0x11   : > { %s3430_s6 = sld [smem:[#allocation16_spill]]  ;;  %s2809_s23 = smov 128  }
  0x12   : > { %p2496_p9 = pneg %p2911_p8  ;;  %s2810_s24 = smov 8  }
  0x13   : > { %s2811_s25 = smov [#allocation7]   ;;  %s2812_s10 = smov 256  }
  0x14   : > { %p2919_p10 = pnand %p2496_p9, %p73_p1  ;;  %s273_s26 = sshll.u32 %s2811_s25, 4  ;;  %s274_s26 = int_to_ptr.vmem [resolvable:$true] %s273_s26 }
  0x15   : > { %s257_s15 = sshll.u32 %s3427_s5, 4  ;;  %s2813_s13 = smov 16   ;;  %s258_s15 = int_to_ptr.hbm [resolvable:$true] %s257_s15 }
  0x16   : > { %2499 = dma.hbm_to_vmem [thread:$0]  (!%p2919_p10), %s258_s15, 2048, %s260_s18, [#allocation6], %s2809_s23, %s2809_s23, %s2810_s24  }
  0x17   : > { %s271_s22 = sshll.u32 %s3430_s6, 4  ;;  %s285_s20 = sshll.u32 %s3419_s7, 4  ;;  %s272_s22 = int_to_ptr.hbm [resolvable:$true] %s271_s22  ;;  %s286_s20 = int_to_ptr.hbm [resolvable:$true] %s285_s20 }
  0x18   : > { %2502 = dma.hbm_to_vmem [thread:$0]  (!%p2919_p10), %s272_s22, 4096, %s274_s26, [#allocation6], %s2812_s10, %s2812_s10, %s2813_s13  }
  0x19   : > { %s2814_s15 = smov [#allocation8]   ;;  %s3421_s21 = smov 64  }
  0x1a   : > { %s287_s18 = sshll.u32 %s2814_s15, 4  ;;  %s3422_s23 = smov 4   ;;  %s288_s18 = int_to_ptr.vmem [resolvable:$true] %s287_s18 }
  0x1b   : > { %2505 = dma.hbm_to_vmem [thread:$0]  (!%p2919_p10), %s286_s20, 2048, %s288_s18, [#allocation9], %s3421_s21, %s3421_s21, %s3422_s23  }
  0x1c   : > { %s2940_s22 = sadd.s32 1, %s2806_s30   ;;  %s59_s25 = sadd.s32 1, %s2802_s29 }
  0x1d   : > { %s56_s24 = ssub.s32 %s2806_s30, %s2940_s22  ;;  %p66_p13 = scmp.ne.s32.totalorder %s2802_s29, %s2798_s28 }
  0x1e   : > { %p57_p12 = scmp.eq.s32.totalorder %s56_s24, 0  ;;  %p67_p0 = scmp.eq.s32.totalorder %s2806_s30, 0 }
  0x1f   : > { %p2953_p3 = por %p227_p2, %p66_p13  ;;  %p2517_p5 = scmp.lt.s32.totalorder %s2806_s30, 2 }
  0x20   : > { %s2949_s26 = scalar_select %p57_p12, %s2802_s29, %s59_s25  }
  0x21   : > { %s309_s19 = sand.u32 1, %s2802_s29   ;;  %s2400_s13 = sshll.u32 %s2806_s30, 6 }
  0x22   : > { %p68_p7 = por %p67_p0, %p66_p13  ;;  %s2082_s14 = sshll.u32 %s309_s19, 6 }
  0x23   : > { %s318_s15 = scalar_lea.hbm %s3413_s1, %s2400_s13  ;;  %s313_s24 = scalar_lea.vmem [#allocation2], %s2082_s14 }
  0x24   : > { %s319_s18 = sshll.u32 %s318_s15, 4  ;;  %s321_s21 = sshll.u32 %s313_s24, 4  ;;  %s320_s18 = int_to_ptr.hbm [resolvable:$true] %s319_s18  ;;  %s322_s21 = int_to_ptr.vmem [resolvable:$true] %s321_s21 }
  0x25   : > { %p2963_p9 = pnand %p2517_p5, %p68_p7  ;;  %s310_s23 = scalar_lea.sflag [#allocation3], %s309_s19 }
  0x26   : > { %s2702_s5 = sshra.s32 %s320_s18, 4  ;;  %s2709_s14 = scalar_lea.hbm %s3413_s1, 128  ;;  %s2703_s5 = int_to_ptr.hbm [resolvable:$true] %s2702_s5 }
  0x27   : > { %s2704_s6 = scalar_lea.hbm %s2703_s5, 64  ;;  %p2706_p10 = pneg %p2963_p9 }
  0x28   : > { %p2705_p2 = scmp.ne.s32.totalorder %s2703_s5, %s2704_s6  ;;  %p2710_p0 = scmp.lt.s32.totalorder %s2703_s5, %s3413_s1 }
  0x29   : > { %p2711_p5 = scmp.lt.s32.totalorder %s2709_s14, %s2704_s6 }
  0x2a   : > { %p2707_p12 = pnand %p2706_p10, %p2705_p2 }
  0x2b   : > { %p2712_p7 = por %p2711_p5, %p2710_p0 }
  0x2c   : > { %p2708_p13 = pneg %p2707_p12 }
  0x2e   : > { %p2713_p11 = pnand %p2712_p7, %p2708_p13 }
  0x30   : > { %2716 = shalt.err (!%p2713_p11)
}
  0x31   : > { %s3433_s19 = smov 4   ;;  %s3434_s24 = smov 64  }
  0x32   : > { %2509 = dma.hbm_to_vmem [thread:$0]  (!%p2963_p9), %s320_s18, 1024, %s322_s21, %s310_s23, %s3434_s24, %s3434_s24, %s3433_s19  }
  0x33   : > { %341 = sbr.rel (%p2911_p8) target bundleno = 1444 (0x5a4), region = 52  ;;  %s2983_s13 = sand.u32 (!%p2911_p8), 1, %s2798_s28  }
  0x34   : > { %s2086_s5 = sshll.u32 (!%p2911_p8), %s2983_s13, 6  ;;  %s344_s6 = scalar_lea.sflag (!%p2911_p8), [#allocation3], %s2983_s13 }
  0x35   : > { %s2987_s17 = scalar_lea.vmem (!%p2911_p8), [#allocation2], %s2086_s5 }
  0x38   : > { %2777 = dma.done.wait (%p2898_p4), %s344_s6, 1024  }
  0x39   : > { %2779 = vsyncadd (%p2898_p4), %s344_s6, 4294966272 }
  0x3a   : > { %2781 = dma.done.wait (%p73_p1), [#allocation6], 6144  }
  0x3b   : > { %2783 = vsyncadd (%p73_p1), [#allocation6], 4294961152 }
  0x3c   : > { %2785 = dma.done.wait (%p73_p1), [#allocation9], 2048  }
  0x3d   : > { %2787 = vsyncadd (%p73_p1), [#allocation9], 4294965248  ;;  %p406_p8 = scmp.lt.s32.totalorder %s2889_s9, 1  ;;  %v2305_v0 = vld [vmem:[#allocation7 + $0xe0] sm:$0xf]  ;;  %v3023_v52 = vld [vmem:[%s2987_s17 + $0x8] sm:$0xff] }
  0x3e   : > { %v2457_v1 = vld [vmem:[#allocation7 + $0xec] sm:$0xf0]  ;;  %v2455_v2 = vld [vmem:[#allocation7 + $0xe4] sm:$0xf]  ;;  %v2307_v4 = vld [vmem:[#allocation7 + $0xf0] sm:$0xf0] }
  0x3f   : > { %s3003_s16 = scalar_select %p406_p8, %s2889_s9, 1  ;;  %v2306_v3 = vor.u32 %v2457_v1, %v2305_v0  ;;  %v2289_v6 = vld [vmem:[#allocation7 + $0xc0] sm:$0xf]  ;;  %v2310_v7 = vor.u32 %v2455_v2, %v2307_v4  ;;  %v2453_v9 = vld [vmem:[#allocation7 + $0xcc] sm:$0xf0]  ;;  %v3033_v54 = vld [vmem:[%s2987_s17 + $0x18] sm:$0xff] }
  0x40   : > { %v2451_v10 = vld [vmem:[#allocation7 + $0xc4] sm:$0xf]  ;;  %v2291_v11 = vld [vmem:[#allocation7 + $0xd0] sm:$0xf0]  ;;  %v2290_v12 = vor.u32 %v2453_v9, %v2289_v6  ;;  %v2273_v14 = vld [vmem:[#allocation7 + $0xa0] sm:$0xf] }
  0x41   : > { %s2401_s11 = sshll.u32 %s3003_s16, 3  ;;  %865 = vmatpush.bf16.msra.mxu2 %v2306_v3  ;;  %914 = vmatpush.bf16.msra.mxu3 %v2310_v7  ;;  %v2294_v13 = vor.u32 %v2451_v10, %v2291_v11  ;;  %v2449_v15 = vld [vmem:[#allocation7 + $0xac] sm:$0xf0]  ;;  %v2447_v16 = vld [vmem:[#allocation7 + $0xa4] sm:$0xf]  ;;  %v2817_v55 = vmov 128.0  }
  0x42   : > { %s410_s18 = scalar_lea.vmem %s3412_s0, %s2401_s11  ;;  %v2275_v17 = vld [vmem:[#allocation7 + $0xb0] sm:$0xf0]  ;;  %v2274_v18 = vor.u32 %v2449_v15, %v2273_v14  ;;  %v2257_v21 = vld [vmem:[#allocation7 + $0x80] sm:$0xf]  ;;  %v2445_v22 = vld [vmem:[#allocation7 + $0x8c] sm:$0xf0]  ;;  %2574 = vrcp.f32 %v2817_v55 }
  0x43   : > { %v3009_v5 = vld [vmem:[%s410_s18] sm:$0xff]   ;;  %v2278_v19 = vor.u32 %v2447_v16, %v2275_v17  ;;  %v2259_v24 = vld [vmem:[#allocation7 + $0x90] sm:$0xf0]  ;;  %v2258_v25 = vor.u32 %v2445_v22, %v2257_v21  ;;  %v2441_v28 = vld [vmem:[#allocation7 + $0x6c] sm:$0xf0]  ;;  %s2818_s25 = smov 64  }
  0x44   : > { %v2478_v8 = vunpack.c.l.bf16 %v3009_v5  ;;  %v2479_v20 = vunpack.c.h.bf16 %v3009_v5  ;;  %v2443_v23 = vld [vmem:[#allocation7 + $0x84] sm:$0xf]  ;;  %v2241_v27 = vld [vmem:[#allocation7 + $0x60] sm:$0xf]  ;;  %v2243_v30 = vld [vmem:[#allocation7 + $0x70] sm:$0xf0] }
  0x45   : > { %866 = vmatpush.bf16.msra.mxu2 %v2290_v12  ;;  %915 = vmatpush.bf16.msra.mxu3 %v2294_v13  ;;  %v2262_v26 = vor.u32 %v2443_v23, %v2259_v24  ;;  %v2439_v29 = vld [vmem:[#allocation7 + $0x64] sm:$0xf]  ;;  %v2242_v31 = vor.u32 %v2441_v28, %v2241_v27  ;;  %v2225_v33 = vld [vmem:[#allocation7 + $0x40] sm:$0xf]  ;;  %v2437_v34 = vld [vmem:[#allocation7 + $0x4c] sm:$0xf0] }
  0x46   : > { %421 = vadd.xlane.f32.xlu0 %v2478_v8  ;;  %v2246_v32 = vor.u32 %v2439_v29, %v2243_v30  ;;  %v2435_v35 = vld [vmem:[#allocation7 + $0x44] sm:$0xf]  ;;  %v2227_v36 = vld [vmem:[#allocation7 + $0x50] sm:$0xf0]  ;;  %v2226_v37 = vor.u32 %v2437_v34, %v2225_v33  ;;  %v2209_v39 = vld [vmem:[#allocation7 + $0x20] sm:$0xf] }
  0x47   : > { %v2230_v38 = vor.u32 %v2435_v35, %v2227_v36  ;;  %v2433_v40 = vld [vmem:[#allocation7 + $0x2c] sm:$0xf0]  ;;  %v2431_v41 = vld [vmem:[#allocation7 + $0x24] sm:$0xf]  ;;  %v2211_v42 = vld [vmem:[#allocation7 + $0x30] sm:$0xf0] }
  0x48   : > { %v2210_v43 = vor.u32 %v2433_v40, %v2209_v39  ;;  %v2214_v44 = vor.u32 %v2431_v41, %v2211_v42  ;;  %v2193_v45 = vld [vmem:[#allocation7] sm:$0xf]  ;;  %v2429_v46 = vld [vmem:[#allocation7 + $0xc] sm:$0xf0]  ;;  %v2427_v47 = vld [vmem:[#allocation7 + $0x4] sm:$0xf]  ;;  %v2575_v57 = vpop.eup %2574 }
  0x49   : > { %867 = vmatpush.bf16.msra.mxu2 %v2274_v18  ;;  %916 = vmatpush.bf16.msra.mxu3 %v2278_v19  ;;  %v2195_v48 = vld [vmem:[#allocation7 + $0x10] sm:$0xf0]  ;;  %v2194_v49 = vor.u32 %v2429_v46, %v2193_v45  ;;  %v3018_v51 = vld [vmem:[%s2987_s17] sm:$0xff]  ;;  %v426_v58 = vmul.f32 128.0, %v2575_v57  ;;  %v3043_v61 = vld [vmem:[%s2987_s17 + $0x28] sm:$0xff]  ;;  %vm430_vm0 = vweird.f32 %v2575_v57  ;;  %vm1181_vm7 = vcmask 523264  }
  0x4a   : > { %v2198_v50 = vor.u32 %v2427_v47, %v2195_v48  ;;  %v3028_v53 = vld [vmem:[%s2987_s17 + $0x10] sm:$0xff]  ;;  %v3038_v56 = vld [vmem:[%s2987_s17 + $0x20] sm:$0xff]  ;;  %v3069_v10 = vld [vmem:[%s2987_s17 + $0x38] sm:$0xff]  ;;  %s2402_s24 = sshll.u32 %s3003_s16, 4  ;;  %s2090_s16 = sshll.u32 %s2983_s13, 4 }
  0x4b   : > { %v427_v59 = vsub.f32 1.0, %v426_v58  ;;  %v3057_v4 = vld [vmem:[%s2987_s17 + $0x30] sm:$0xff]  ;;  %v2155_v29 = vld [vmem:[#allocation5 + $0x78] sm:$0xf0]  ;;  %v2416_v33 = vld [vmem:[#allocation5 + $0x64] sm:$0xf0]  ;;  %s415_s17 = scalar_lea.vmem %s3414_s2, %s2402_s24 }
  0x4c   : > { %v2417_v27 = vld [vmem:[#allocation5 + $0x74] sm:$0xf]  ;;  %v2415_v34 = vld [vmem:[#allocation5 + $0x64] sm:$0xf]  ;;  %v2137_v40 = vld [vmem:[#allocation5 + $0x50] sm:$0xf] }
  0x4d   : > { %868 = vmatpush.bf16.msra.mxu2 %v2258_v25  ;;  %917 = vmatpush.bf16.msra.mxu3 %v2262_v26  ;;  %v428_v60 = vmul.f32 %v2575_v57, %v427_v59  ;;  %v2153_v25 = vld [vmem:[#allocation5 + $0x70] sm:$0xf]  ;;  %v2418_v26 = vld [vmem:[#allocation5 + $0x74] sm:$0xf0]  ;;  %v2158_v30 = vor.u32 %v2417_v27, %v2155_v29  ;;  %v2413_v42 = vld [vmem:[#allocation5 + $0x54] sm:$0xf] }
  0x4e   : > { %423 = vadd.xlane.f32.xlu0 %v2479_v20  ;;  %v2154_v28 = vor.u32 %v2418_v26, %v2153_v25  ;;  %v2414_v41 = vld [vmem:[#allocation5 + $0x54] sm:$0xf0]  ;;  %v2129_v47 = vld [vmem:[#allocation5 + $0x40] sm:$0xf]  ;;  %v2412_v48 = vld [vmem:[#allocation5 + $0x44] sm:$0xf0] }
  0x4f   : > { %v429_v62 = vadd.f32 %v2575_v57, %v428_v60  ;;  %591 = vmatpush.bf16.msra.mxu1 %v2158_v30  ;;  %v2130_v55 = vor.u32 %v2412_v48, %v2129_v47  ;;  %v2121_v60 = vld [vmem:[#allocation5 + $0x30] sm:$0xf]  ;;  %v2107_v30 = vld [vmem:[#allocation5 + $0x18] sm:$0xf0]  ;;  %v2297_v48 = vld [vmem:[#allocation7 + $0xc8] sm:$0xf] }
  0x50   : > { %577 = vmatpush.bf16.msra.mxu0 %v2154_v28  ;;  %v2105_v27 = vld [vmem:[#allocation5 + $0x10] sm:$0xf]  ;;  %v2406_v28 = vld [vmem:[#allocation5 + $0x14] sm:$0xf0]  ;;  %s2475_s11 = sshll.u32 %s2889_s9, 4  ;;  %s1935_s9 = scalar_lea.sflag [#allocation4], %s2983_s13 }
  0x51   : > { %869 = vmatpush.bf16.msra.mxu2 %v2242_v31  ;;  %918 = vmatpush.bf16.msra.mxu3 %v2246_v32  ;;  %v3047_v63 = vsel %vm430_vm0, %v2575_v57, %v429_v62  ;;  %v2145_v32 = vld [vmem:[#allocation5 + $0x60] sm:$0xf]  ;;  %v2131_v57 = vld [vmem:[#allocation5 + $0x48] sm:$0xf0]  ;;  %v2410_v62 = vld [vmem:[#allocation5 + $0x34] sm:$0xf0]  ;;  %s1946_s18 = scalar_lea.hbm %s3420_s8, %s2475_s11 }
  0x52   : > { %v2146_v36 = vor.u32 %v2416_v33, %v2145_v32  ;;  %v2097_v33 = vld [vmem:[#allocation5] sm:$0xf]  ;;  %s1949_s20 = sshll.u32 %s1946_s18, 4  ;;  %s2752_s6 = scalar_lea.hbm %s3420_s8, 32  ;;  %s1950_s20 = int_to_ptr.hbm [resolvable:$true] %s1949_s20 }
  0x53   : > { %s2746_s15 = sshra.s32 %s1950_s20, 4  ;;  %s2747_s15 = int_to_ptr.hbm [resolvable:$true] %s2746_s15 }
  0x54   : > { %578 = vmatpush.bf16.msra.mxu0 %v2146_v36  ;;  %s2748_s19 = scalar_lea.hbm %s2747_s15, 16  ;;  %p2753_p9 = scmp.lt.s32.totalorder %s2747_s15, %s3420_s8 }
  0x55   : > { %870 = vmatpush.bf16.msra.mxu2 %v2226_v37  ;;  %919 = vmatpush.bf16.msra.mxu3 %v2230_v38  ;;  %v2147_v37 = vld [vmem:[#allocation5 + $0x68] sm:$0xf0]  ;;  %p2749_p1 = scmp.ne.s32.totalorder %s2747_s15, %s2748_s19  ;;  %p2754_p2 = scmp.lt.s32.totalorder %s2752_s6, %s2748_s19 }
  0x56   : > { %v2150_v39 = vor.u32 %v2415_v34, %v2147_v37  ;;  %v2404_v34 = vld [vmem:[#allocation5 + $0x4] sm:$0xf0] }
  0x57   : > { %v2098_v37 = vor.u32 %v2404_v34, %v2097_v33  ;;  %v2249_v33 = vld [vmem:[#allocation7 + $0x68] sm:$0xf]  ;;  %v2442_v34 = vld [vmem:[#allocation7 + $0x74] sm:$0xf0]  ;;  %p2750_p4 = pnand %p2749_p1, %p2953_p3  ;;  %p2755_p10 = por %p2754_p2, %p2753_p9 }
  0x58   : > { %592 = vmatpush.bf16.msra.mxu1 %v2150_v39  ;;  %v2099_v39 = vld [vmem:[#allocation5 + $0x8] sm:$0xf0] }
  0x59   : > { %871 = vmatpush.bf16.msra.mxu2 %v2210_v43  ;;  %920 = vmatpush.bf16.msra.mxu3 %v2214_v44  ;;  %v2138_v43 = vor.u32 %v2414_v41, %v2137_v40  ;;  %v2139_v44 = vld [vmem:[#allocation5 + $0x58] sm:$0xf0]  ;;  %v2313_v40 = vld [vmem:[#allocation7 + $0xe8] sm:$0xf]  ;;  %v2458_v41 = vld [vmem:[#allocation7 + $0xf4] sm:$0xf0]  ;;  %p2751_p11 = pneg %p2750_p4 }
  0x5a   : > { %v2142_v45 = vor.u32 %v2413_v42, %v2139_v44  ;;  %v2314_v44 = vor.u32 %v2458_v41, %v2313_v40  ;;  %v2233_v41 = vld [vmem:[#allocation7 + $0x48] sm:$0xf] }
  0x5b   : > { %579 = vmatpush.bf16.msra.mxu0 %v2138_v43  ;;  %p2756_p12 = pnand %p2755_p10, %p2751_p11 }
  0x5c   : > { %593 = vmatpush.bf16.msra.mxu1 %v2142_v45  ;;  %v2456_v45 = vld [vmem:[#allocation7 + $0xec] sm:$0xf] }
  0x5d   : > { %872 = vmatpush.bf16.msra.mxu2 %v2194_v49  ;;  %921 = vmatpush.bf16.msra.mxu3 %v2198_v50  ;;  %v2411_v49 = vld [vmem:[#allocation5 + $0x44] sm:$0xf] }
  0x5e   : > { %v2134_v59 = vor.u32 %v2411_v49, %v2131_v57  ;;  %v2454_v49 = vld [vmem:[#allocation7 + $0xd4] sm:$0xf0]  ;;  %v2299_v57 = vld [vmem:[#allocation7 + $0xd8] sm:$0xf0] }
  0x5f   : > { %580 = vmatpush.bf16.msra.mxu0 %v2130_v55  ;;  %v2298_v55 = vor.u32 %v2454_v49, %v2297_v48  ;;  %v2235_v48 = vld [vmem:[#allocation7 + $0x58] sm:$0xf0] }
  0x60   : > { %873 = vmatmul.bf16.vlgmr.msra.gmra.mxu2 %v3018_v51  ;;  %922 = vmatmul.bf16.vlgmr.msra.gmra.mxu3 %v3018_v51 }
  0x61   : > { %594 = vmatpush.bf16.msra.mxu1 %v2134_v59 }
  0x70   : > { %878 = vmatmul.bf16.gmra.mxu2 %v3023_v52  ;;  %927 = vmatmul.bf16.gmra.mxu3 %v3023_v52 }
  0x80   : > { %883 = vmatmul.bf16.gmra.mxu2 %v3028_v53  ;;  %932 = vmatmul.bf16.gmra.mxu3 %v3028_v53 }
  0x90   : > { %888 = vmatmul.bf16.gmra.mxu2 %v3033_v54  ;;  %937 = vmatmul.bf16.gmra.mxu3 %v3033_v54 }
  0xa0   : > { %893 = vmatmul.bf16.gmra.mxu2 %v3038_v56  ;;  %942 = vmatmul.bf16.gmra.mxu3 %v3038_v56 }
  0xb0   : > { %898 = vmatmul.bf16.gmra.mxu2 %v3043_v61  ;;  %947 = vmatmul.bf16.gmra.mxu3 %v3043_v61 }
  0xb9   : > { %v422_v0 = vpop.xlane.xlu0 %421 }
  0xba   : > { %v432_v1 = vmul.f32 %v3047_v63, %v422_v0  ;;  %v2409_v0 = vld [vmem:[#allocation5 + $0x34] sm:$0xf] }
  0xbc   : > { %v3052_v2 = vsub.f32 %v2478_v8, %v432_v1  ;;  %v2122_v1 = vor.u32 %v2410_v62, %v2121_v60 }
  0xbe   : > { %v436_v3 = vmul.f32 %v3052_v2, %v3052_v2  ;;  %581 = vmatpush.bf16.msra.mxu0 %v2122_v1 }
  0xc0   : > { %438 = vadd.xlane.f32.xlu1 %v436_v3  ;;  %903 = vmatmul.bf16.gmra.mxu2 %v3057_v4  ;;  %v2123_v3 = vld [vmem:[#allocation5 + $0x38] sm:$0xf0] }
  0xc1   : > { %v424_v6 = vpop.xlane.xlu0 %423  ;;  %952 = vmatmul.bf16.gmra.mxu3 %v3057_v4 }
  0xc2   : > { %v433_v7 = vmul.f32 %v3047_v63, %v424_v6  ;;  %v2126_v6 = vor.u32 %v2409_v0, %v2123_v3 }
  0xc4   : > { %v3062_v9 = vsub.f32 %v2479_v20, %v433_v7  ;;  %595 = vmatpush.bf16.msra.mxu1 %v2126_v6 }
  0xc6   : > { %v437_v8 = vmul.f32 %v3062_v9, %v3062_v9 }
  0xc8   : > { %440 = vadd.xlane.f32.xlu1 %v437_v8 }
  0xd0   : > { %908 = vmatmul.bf16.gmra.mxu2 %v3069_v10 }
  0xd1   : > { %957 = vmatmul.bf16.gmra.mxu3 %v3069_v10 }
  0xe3   : > { %v874_v11 = vpop.f32.mrf.mxu2  ;;  %v923_v12 = vpop.f32.mrf.mxu3 }
  0xe4   : > { %v3073_v13 = vpack.c.bf16 %v923_v12, %v874_v11 }
  0xe6   : > { %v1451_v7 = vunpack.c.h.b16 %v3073_v13  ;;  %v1157_v11 = vunpack.c.l.b16 %v3073_v13  ;;  %v2405_v13 = vld [vmem:[#allocation5 + $0x14] sm:$0xf] }
  0xeb   : > { %v876_v5 = vpop.f32.mrf.mxu2  ;;  %v925_v14 = vpop.f32.mrf.mxu3 }
  0xec   : > { %v3075_v15 = vpack.c.bf16 %v925_v14, %v876_v5  ;;  %v2113_v14 = vld [vmem:[#allocation5 + $0x20] sm:$0xf] }
  0xee   : > { %v1452_v8 = vunpack.c.h.b16 %v3075_v15  ;;  %v1158_v12 = vunpack.c.l.b16 %v3075_v15  ;;  %v2106_v15 = vor.u32 %v2406_v28, %v2105_v27  ;;  %v2267_v27 = vld [vmem:[#allocation7 + $0x98] sm:$0xf0] }
  0xf0   : > { %v3093_v26 = vpack.c.b16 %v1452_v8, %v1451_v7  ;;  %v3095_v29 = vpack.c.b16 %v1158_v12, %v1157_v11  ;;  %v2281_v7 = vld [vmem:[#allocation7 + $0xa8] sm:$0xf]  ;;  %v2450_v8 = vld [vmem:[#allocation7 + $0xb4] sm:$0xf0]  ;;  %v2448_v11 = vld [vmem:[#allocation7 + $0xac] sm:$0xf] }
  0xf1   : > { %v2282_v12 = vor.u32 %v2450_v8, %v2281_v7  ;;  %v2217_v7 = vld [vmem:[#allocation7 + $0x28] sm:$0xf] }
  0xf3   : > { %v879_v16 = vpop.f32.mrf.mxu2  ;;  %v928_v17 = vpop.f32.mrf.mxu3 }
  0xf4   : > { %v3077_v18 = vpack.c.bf16 %v928_v17, %v879_v16  ;;  %v2408_v16 = vld [vmem:[#allocation5 + $0x24] sm:$0xf0]  ;;  %v2407_v17 = vld [vmem:[#allocation5 + $0x24] sm:$0xf] }
  0xf6   : > { %v1159_v59 = vunpack.c.l.b16 %v3077_v18  ;;  %v1453_v0 = vunpack.c.h.b16 %v3077_v18  ;;  %v2446_v18 = vld [vmem:[#allocation7 + $0x94] sm:$0xf0] }
  0xfb   : > { %v881_v19 = vpop.f32.mrf.mxu2  ;;  %v930_v20 = vpop.f32.mrf.mxu3 }
  0xfc   : > { %v3079_v21 = vpack.c.bf16 %v930_v20, %v881_v19  ;;  %v2114_v20 = vor.u32 %v2408_v16, %v2113_v14 }
  0xfe   : > { %582 = vmatpush.bf16.msra.mxu0 %v2114_v20  ;;  %v1160_v60 = vunpack.c.l.b16 %v3079_v21  ;;  %v1454_v1 = vunpack.c.h.b16 %v3079_v21  ;;  %v2444_v20 = vld [vmem:[#allocation7 + $0x8c] sm:$0xf] }
  0xff   : > { %v2270_v28 = vor.u32 %v2444_v20, %v2267_v27  ;;  %v2201_v20 = vld [vmem:[#allocation7 + $0x8] sm:$0xf] }
 0x100   : > { %v3107_v16 = vpack.c.b16 %v1160_v60, %v1159_v59  ;;  %v3109_v21 = vpack.c.b16 %v1454_v1, %v1453_v0 }
 0x102   : > { %583 = vmatpush.bf16.msra.mxu0 %v2106_v15 }
 0x103   : > { %v884_v22 = vpop.f32.mrf.mxu2  ;;  %v933_v23 = vpop.f32.mrf.mxu3 }
 0x104   : > { %v3081_v24 = vpack.c.bf16 %v933_v23, %v884_v22  ;;  %v2115_v22 = vld [vmem:[#allocation5 + $0x28] sm:$0xf0] }
 0x105   : > { %v2118_v25 = vor.u32 %v2407_v17, %v2115_v22 }
 0x106   : > { %584 = vmatpush.bf16.msra.mxu0 %v2098_v37  ;;  %v1455_v15 = vunpack.c.h.b16 %v3081_v24  ;;  %v2251_v37 = vld [vmem:[#allocation7 + $0x78] sm:$0xf0]  ;;  %v1161_v59 = vunpack.c.l.b16 %v3081_v24 }
 0x107   : > { %596 = vmatpush.bf16.msra.mxu1 %v2118_v25 }
 0x10a   : > { %963 = vmatpush.bf16.msrb.mxu0 %v2314_v44  ;;  %v2436_v44 = vld [vmem:[#allocation7 + $0x4c] sm:$0xf] }
 0x10b   : > { %v886_v31 = vpop.f32.mrf.mxu2  ;;  %v935_v35 = vpop.f32.mrf.mxu3 }
 0x10c   : > { %v3083_v38 = vpack.c.bf16 %v935_v35, %v886_v31  ;;  %v2110_v31 = vor.u32 %v2405_v13, %v2107_v30  ;;  %v2403_v35 = vld [vmem:[#allocation5 + $0x4] sm:$0xf] }
 0x10d   : > { %v2102_v43 = vor.u32 %v2403_v35, %v2099_v39  ;;  %v2440_v35 = vld [vmem:[#allocation7 + $0x6c] sm:$0xf] }
 0x10e   : > { %597 = vmatpush.bf16.msra.mxu1 %v2110_v31  ;;  %964 = vmatpush.bf16.msrb.mxu0 %v2298_v55  ;;  %v1456_v30 = vunpack.c.h.b16 %v3083_v38  ;;  %v2254_v39 = vor.u32 %v2440_v35, %v2251_v37  ;;  %v1162_v60 = vunpack.c.l.b16 %v3083_v38 }
 0x110   : > { %v3123_v38 = vpack.c.b16 %v1162_v60, %v1161_v59 }
 0x112   : > { %598 = vmatpush.bf16.msra.mxu1 %v2102_v43  ;;  %965 = vmatpush.bf16.msrb.mxu0 %v2282_v12  ;;  %v2438_v43 = vld [vmem:[#allocation7 + $0x54] sm:$0xf0] }
 0x113   : > { %v889_v46 = vpop.f32.mrf.mxu2  ;;  %v938_v50 = vpop.f32.mrf.mxu3 }
 0x114   : > { %v3085_v58 = vpack.c.bf16 %v938_v50, %v889_v46  ;;  %v2315_v46 = vld [vmem:[#allocation7 + $0xf8] sm:$0xf0]  ;;  %v2452_v50 = vld [vmem:[#allocation7 + $0xcc] sm:$0xf] }
 0x115   : > { %v2318_v47 = vor.u32 %v2456_v45, %v2315_v46  ;;  %v2302_v62 = vor.u32 %v2452_v50, %v2299_v57  ;;  %v3117_v45 = vpack.c.b16 %v1456_v30, %v1455_v15  ;;  %v2238_v50 = vor.u32 %v2436_v44, %v2235_v48  ;;  %v2203_v30 = vld [vmem:[#allocation7 + $0x18] sm:$0xf0] }
 0x116   : > { %v1457_v48 = vunpack.c.h.b16 %v3085_v58 }
 0x117   : > { %1012 = vmatpush.bf16.msrb.mxu1 %v2318_v47  ;;  %v2234_v47 = vor.u32 %v2438_v43, %v2233_v41 }
 0x11b   : > { %v891_v5 = vpop.f32.mrf.mxu2  ;;  %v940_v19 = vpop.f32.mrf.mxu3  ;;  %1013 = vmatpush.bf16.msrb.mxu1 %v2302_v62 }
 0x11c   : > { %v3091_v23 = vpack.c.bf16 %v940_v19, %v891_v5  ;;  %v2283_v5 = vld [vmem:[#allocation7 + $0xb8] sm:$0xf0]  ;;  %v2265_v19 = vld [vmem:[#allocation7 + $0x88] sm:$0xf] }
 0x11d   : > { %v2286_v14 = vor.u32 %v2448_v11, %v2283_v5  ;;  %v2266_v25 = vor.u32 %v2446_v18, %v2265_v19 }
 0x11e   : > { %v1458_v59 = vunpack.c.h.b16 %v3091_v23 }
 0x11f   : > { %1014 = vmatpush.bf16.msrb.mxu1 %v2286_v14  ;;  %966 = vmatpush.bf16.msrb.mxu0 %v2266_v25  ;;  %v2432_v14 = vld [vmem:[#allocation7 + $0x2c] sm:$0xf] }
 0x120   : > { %v2428_v25 = vld [vmem:[#allocation7 + $0xc] sm:$0xf] }
 0x123   : > { %v894_v32 = vpop.f32.mrf.mxu2  ;;  %v943_v36 = vpop.f32.mrf.mxu3  ;;  %1015 = vmatpush.bf16.msrb.mxu1 %v2270_v28 }
 0x124   : > { %v3097_v42 = vpack.c.bf16 %v943_v36, %v894_v32  ;;  %v2250_v36 = vor.u32 %v2442_v34, %v2249_v33  ;;  %v2206_v33 = vor.u32 %v2428_v25, %v2203_v30 }
 0x126   : > { %967 = vmatpush.bf16.msrb.mxu0 %v2250_v36 }
 0x127   : > { %1016 = vmatpush.bf16.msrb.mxu1 %v2254_v39 }
 0x12a   : > { %968 = vmatpush.bf16.msrb.mxu0 %v2234_v47  ;;  %v1163_v47 = vunpack.c.l.b16 %v3085_v58 }
 0x12b   : > { %v3103_v3 = vpop.f32.mrf.mxu2  ;;  %v3105_v6 = vpop.f32.mrf.mxu3  ;;  %1017 = vmatpush.bf16.msrb.mxu1 %v2238_v50  ;;  %v2572_v50 = vld [vmem:[%s3415_s3] ss:$0 sm:$0xff] }
 0x133   : > { %v439_v17 = vpop.xlane.xlu1 %438  ;;  %v899_v31 = vpop.f32.mrf.mxu2 }
 0x134   : > { %v442_v22 = vmul.f32 %v439_v17, %v3047_v63  ;;  %v948_v32 = vpop.f32.mrf.mxu3  ;;  %v2219_v17 = vld [vmem:[#allocation7 + $0x38] sm:$0xf0] }
 0x135   : > { %v1108_v49 = vpack.c.bf16 %v948_v32, %v899_v31  ;;  %v2222_v19 = vor.u32 %v2432_v14, %v2219_v17 }
 0x136   : > { %v3112_v13 = vadd.f32 1e-05, %v442_v22  ;;  %v2430_v22 = vld [vmem:[#allocation7 + $0x14] sm:$0xf0] }
 0x137   : > { %v1167_v11 = vunpack.c.l.b16 %v1108_v49  ;;  %1018 = vmatpush.bf16.msrb.mxu1 %v2222_v19  ;;  %v2202_v15 = vor.u32 %v2430_v22, %v2201_v20  ;;  %v1461_v32 = vunpack.c.h.b16 %v1108_v49 }
 0x138   : > { %2576 = vrsqrt.f32 %v3112_v13  ;;  %vm452_vm2 = vweird.f32 %v3112_v13 }
 0x13b   : > { %v441_v40 = vpop.xlane.xlu1 %440  ;;  %v901_v0 = vpop.f32.mrf.mxu2  ;;  %1019 = vmatpush.bf16.msrb.mxu1 %v2206_v33 }
 0x13c   : > { %v443_v46 = vmul.f32 %v441_v40, %v3047_v63  ;;  %v950_v1 = vpop.f32.mrf.mxu3  ;;  %v2434_v63 = vld [vmem:[#allocation7 + $0x34] sm:$0xf0] }
 0x13d   : > { %v1109_v12 = vpack.c.bf16 %v950_v1, %v901_v0  ;;  %v2218_v5 = vor.u32 %v2434_v63, %v2217_v7  ;;  %v2573_v1 = vld [vmem:[%s3416_s4] ss:$0 sm:$0xff]  ;;  %v3146_v63 = vpack.c.b16 %v1458_v59, %v1457_v48  ;;  %v1189_v48 = vsel %vm1181_vm7, %v3107_v16, 0 }
 0x13e   : > { %v2577_v55 = vpop.eup %2576  ;;  %v445_v57 = vadd.f32 1e-05, %v443_v46 }
 0x13f   : > { %v447_v62 = vmul.f32 %v2577_v55, %v3112_v13  ;;  %v1168_v24 = vunpack.c.l.b16 %v1109_v12  ;;  %969 = vmatpush.bf16.msrb.mxu0 %v2218_v5  ;;  %vm453_vm1 = vweird.f32 %v2577_v55  ;;  %v1462_v36 = vunpack.c.h.b16 %v1109_v12 }
 0x140   : > { %2578 = vrsqrt.f32 %v445_v57  ;;  %vm454_vm3 = vmor %vm452_vm2, %vm453_vm1  ;;  %v1164_v13 = vunpack.c.l.b16 %v3091_v23  ;;  %vm462_vm5 = vweird.f32 %v445_v57 }
 0x141   : > { %v448_v8 = vmul.f32 %v2577_v55, %v447_v62  ;;  %v3125_v28 = vpack.c.b16 %v1168_v24, %v1167_v11  ;;  %v3130_v43 = vpack.c.b16 %v1462_v36, %v1461_v32 }
 0x142   : > { %v1176_v7 = vpack.c.b16 %v1164_v13, %v1163_v47 }
 0x143   : > { %v449_v18 = vmul.f32 0.5, %v448_v8  ;;  %1330 = vrot.lane.b32.xlu0 %v3125_v28, %s2818_s25  ;;  %v904_v37 = vpop.f32.mrf.mxu2  ;;  %970 = vmatpush.bf16.msrb.mxu0 %v2202_v15  ;;  %v1107_v15 = vpack.c.bf16 %v3105_v6, %v3103_v3 }
 0x144   : > { %v953_v39 = vpop.f32.mrf.mxu3 }
 0x145   : > { %v450_v27 = vsub.f32 1.5, %v449_v18  ;;  %v1110_v17 = vpack.c.bf16 %v953_v39, %v904_v37  ;;  %v1460_v36 = vunpack.c.h.b16 %v1107_v15  ;;  %v1165_v39 = vunpack.c.l.b16 %v3097_v42 }
 0x146   : > { %v2579_v31 = vpop.eup %2578 }
 0x147   : > { %v451_v34 = vmul.f32 %v2577_v55, %v450_v27  ;;  %v457_v35 = vmul.f32 %v2579_v31, %v445_v57  ;;  %vm463_vm4 = vweird.f32 %v2579_v31  ;;  %v1169_v30 = vunpack.c.l.b16 %v1110_v17 }
 0x148   : > { %vm464_vm6 = vmor %vm462_vm5, %vm463_vm4 }
 0x149   : > { %v458_v40 = vmul.f32 %v2579_v31, %v457_v35  ;;  %v455_v44 = vsel %vm454_vm3, %v2577_v55, %v451_v34  ;;  %v1459_v35 = vunpack.c.h.b16 %v3097_v42 }
 0x14a   : > { %v466_v49 = vmul.f32 %v455_v44, %v3052_v2  ;;  %v1201_v44 = vsel %vm1181_vm7, %v3125_v28, 0  ;;  %v1195_v28 = vsel %vm1181_vm7, %v1176_v7, 0 }
 0x14b   : > { %v459_v41 = vmul.f32 0.5, %v458_v40  ;;  %1607 = vrot.lane.b32.xlu0 %v3130_v43, %s2818_s25  ;;  %v906_v55 = vpop.f32.mrf.mxu2  ;;  %v1471_v3 = vpack.c.b16 %v1460_v36, %v1459_v35  ;;  %v1166_v40 = vunpack.c.l.b16 %v1107_v15 }
 0x14c   : > { %v955_v62 = vpop.f32.mrf.mxu3  ;;  %v472_v2 = vmul.f32 %v2572_v50, %v466_v49  ;;  %v1186_v49 = vsel %vm1181_vm7, %v3095_v29, 0 }
 0x14d   : > { %v460_v46 = vsub.f32 1.5, %v459_v41  ;;  %v1111_v18 = vpack.c.bf16 %v955_v62, %v906_v55  ;;  %v1177_v41 = vpack.c.b16 %v1166_v40, %v1165_v39  ;;  %v1482_v55 = vsel %vm1181_vm7, %v3109_v21, 0  ;;  %v3217_v62 = vld [vmem:[%s415_s17] sm:$0xff] }
 0x14e   : > { %v478_v8 = vadd.f32 %v2573_v1, %v472_v2  ;;  %vm1130_vm14 = vcmp.ne.f32.partialorder %v3217_v62, 0.0 }
 0x14f   : > { %v461_v60 = vmul.f32 %v2579_v31, %v460_v46  ;;  %v1463_v46 = vunpack.c.h.b16 %v1110_v17  ;;  %v1464_v47 = vunpack.c.h.b16 %v1111_v18  ;;  %v1198_v42 = vsel %vm1181_vm7, %v1177_v41, 0 }
 0x151   : > { %v465_v0 = vsel %vm464_vm6, %v2579_v31, %v461_v60  ;;  %v1170_v31 = vunpack.c.l.b16 %v1111_v18 }
 0x152   : > { %v467_v58 = vmul.f32 %v465_v0, %v3062_v9  ;;  %v2819_v0 = vmov 0  }
 0x153   : > { %1322 = vrot.lane.b32.xlu0 %v3107_v16, %s2818_s25  ;;  %v909_v11 = vpop.f32.mrf.mxu2  ;;  %v1179_v37 = vpack.c.b16 %v1170_v31, %v1169_v30  ;;  %v1494_v16 = vsel %vm1181_vm7, %v3130_v43, 0  ;;  %2569 = vset.pattern.permute.xlu1 %v2819_v0 }
 0x154   : > { %v473_v23 = vmul.f32 %v2572_v50, %v467_v58  ;;  %v958_v12 = vpop.f32.mrf.mxu3  ;;  %2570 = vset.pattern.permute.xlu0 %v2819_v0  ;;  %2571 = vset.pattern.permute.xlu2 %v2819_v0 }
 0x155   : > { %v1112_v9 = vpack.c.bf16 %v958_v12, %v909_v11  ;;  %v1204_v6 = vsel %vm1181_vm7, %v1179_v37, 0 }
 0x156   : > { %v479_v57 = vadd.f32 %v2573_v1, %v473_v23  ;;  %v3230_v23 = vld [vmem:[%s415_s17 + $0x8] sm:$0xff] }
 0x157   : > { %v1171_v24 = vunpack.c.l.b16 %v1112_v9  ;;  %v1465_v20 = vunpack.c.h.b16 %v1112_v9  ;;  %v1067_v11 = vmul.f32 64.0, %v3230_v23  ;;  %vm1131_vm15 = vcmp.ne.f32.partialorder %v3230_v23, 0.0 }
 0x158   : > { %v480_v5 = vpack.c.bf16 %v479_v57, %v478_v8 }
 0x159   : > { %v2320_v12 = vadd.f32 -64.0, %v1067_v11 }
 0x15a   : > { %585 = vmatmul.bf16.vlgmr.msra.gmra.mxu0 %v480_v5  ;;  %599 = vmatmul.bf16.vlgmr.msra.gmra.mxu1 %v480_v5 }
 0x15b   : > { %1601 = vrot.lane.b32.xlu0 %v3117_v45, %s2818_s25  ;;  %v911_v14 = vpop.f32.mrf.mxu2 }
 0x15c   : > { %v960_v19 = vpop.f32.mrf.mxu3 }
 0x15d   : > { %v1113_v22 = vpack.c.bf16 %v960_v19, %v911_v14 }
 0x15f   : > { %v1172_v25 = vunpack.c.l.b16 %v1113_v22  ;;  %v1466_v27 = vunpack.c.h.b16 %v1113_v22 }
 0x161   : > { %v1180_v32 = vpack.c.b16 %v1172_v25, %v1171_v24  ;;  %v1474_v33 = vpack.c.b16 %v1466_v27, %v1465_v20 }
 0x163   : > { %1334 = vrot.lane.b32.xlu2 %v1180_v32, %s2818_s25  ;;  %1597 = vrot.lane.b32.xlu0 %v3093_v26, %s2818_s25  ;;  %v1207_v34 = vsel %vm1181_vm7, %v1180_v32, 0 }
 0x164   : > { %1611 = vrot.lane.b32.xlu1 %v1474_v33, %s2818_s25  ;;  %1209 = vmatpush.bf16.xpose.msrb.mxu2 %v1207_v34 }
 0x16a   : > { %971 = vmatmul.bf16.vlgmr.msrb.gmra.mxu0 %v3018_v51  ;;  %1020 = vmatmul.bf16.vlgmr.msrb.gmra.mxu1 %v3018_v51  ;;  %v1473_v51 = vpack.c.b16 %v1464_v47, %v1463_v46 }
 0x16b   : > { %1332 = vrot.lane.b32.xlu2 %v1179_v37, %s2818_s25  ;;  %1077 = vperm.xlu0 %2570, %v2320_v12  }
 0x16c   : > { %1605 = vrot.lane.b32.xlu1 %v1471_v3, %s2818_s25  ;;  %1210 = vmatpush.bf16.xpose.msrb.mxu2 %v1204_v6 }
 0x173   : > { %1328 = vrot.lane.b32.xlu2 %v1177_v41, %s2818_s25 }
 0x174   : > { %1320 = vrot.lane.b32.xlu1 %v3095_v29, %s2818_s25  ;;  %1211 = vmatpush.bf16.xpose.msrb.mxu2 %v1201_v44  ;;  %v1488_v29 = vsel %vm1181_vm7, %v3146_v63, 0 }
 0x17a   : > { %976 = vmatmul.bf16.gmra.mxu0 %v3023_v52  ;;  %1025 = vmatmul.bf16.gmra.mxu1 %v3023_v52  ;;  %v1192_v52 = vsel %vm1181_vm7, %v3123_v38, 0 }
 0x17b   : > { %1609 = vrot.lane.b32.xlu2 %v1473_v51, %s2818_s25 }
 0x17c   : > { %1599 = vrot.lane.b32.xlu1 %v3109_v21, %s2818_s25  ;;  %1212 = vmatpush.bf16.xpose.msrb.mxu2 %v1198_v42 }
 0x183   : > { %1326 = vrot.lane.b32.xlu2 %v1176_v7, %s2818_s25  ;;  %v1479_v7 = vsel %vm1181_vm7, %v3093_v26, 0 }
 0x184   : > { %1213 = vmatpush.bf16.xpose.msrb.mxu2 %v1195_v28 }
 0x18a   : > { %981 = vmatmul.bf16.gmra.mxu0 %v3028_v53  ;;  %1030 = vmatmul.bf16.gmra.mxu1 %v3028_v53  ;;  %v1500_v53 = vsel %vm1181_vm7, %v1474_v33, 0 }
 0x18b   : > { %1324 = vrot.lane.b32.xlu2 %v3123_v38, %s2818_s25  ;;  %v1497_v38 = vsel %vm1181_vm7, %v1473_v51, 0 }
 0x18c   : > { %1214 = vmatpush.bf16.xpose.msrb.mxu2 %v1192_v52 }
 0x193   : > { %1603 = vrot.lane.b32.xlu2 %v3146_v63, %s2818_s25 }
 0x194   : > { %1215 = vmatpush.bf16.xpose.msrb.mxu2 %v1189_v48 }
 0x19a   : > { %986 = vmatmul.bf16.gmra.mxu0 %v3033_v54  ;;  %1035 = vmatmul.bf16.gmra.mxu1 %v3033_v54  ;;  %v1491_v54 = vsel %vm1181_vm7, %v1471_v3, 0 }
 0x19c   : > { %1216 = vmatpush.bf16.xpose.msrb.mxu2 %v1186_v49 }
 0x1a4   : > { %1502 = vmatpush.bf16.xpose.msra.mxu2 %v1500_v53 }
 0x1aa   : > { %991 = vmatmul.bf16.gmra.mxu0 %v3038_v56  ;;  %1040 = vmatmul.bf16.gmra.mxu1 %v3038_v56  ;;  %v1485_v56 = vsel %vm1181_vm7, %v3117_v45, 0 }
 0x1ac   : > { %1503 = vmatpush.bf16.xpose.msra.mxu2 %v1497_v38 }
 0x1b4   : > { %1504 = vmatpush.bf16.xpose.msra.mxu2 %v1494_v16 }
 0x1ba   : > { %996 = vmatmul.bf16.gmra.mxu0 %v3043_v61  ;;  %1045 = vmatmul.bf16.gmra.mxu1 %v3043_v61  ;;  %v1331_v61 = vpop.permute.xlu0 %1330 }
 0x1bb   : > { %v1355_v60 = vsel %vm1181_vm7, %v1331_v61, 0 }
 0x1bc   : > { %1505 = vmatpush.bf16.xpose.msra.mxu2 %v1491_v54 }
 0x1bd   : > { %v1335_v50 = vpop.permute.xlu2 %1334 }
 0x1be   : > { %v1361_v13 = vsel %vm1181_vm7, %v1335_v50, 0 }
 0x1bf   : > { %1363 = vmatpush.bf16.xpose.msra.mxu0 %v1361_v13 }
 0x1c2   : > { %v1608_v20 = vpop.permute.xlu0 %1607 }
 0x1c4   : > { %1506 = vmatpush.bf16.xpose.msra.mxu2 %v1488_v29 }
 0x1c5   : > { %v1333_v43 = vpop.permute.xlu2 %1332 }
 0x1c6   : > { %v1358_v59 = vsel %vm1181_vm7, %v1333_v43, 0 }
 0x1c7   : > { %1364 = vmatpush.bf16.xpose.msra.mxu0 %v1358_v59 }
 0x1ca   : > { %1001 = vmatmul.bf16.gmra.mxu0 %v3057_v4  ;;  %1050 = vmatmul.bf16.gmra.mxu1 %v3057_v4  ;;  %v3220_v4 = vmul.f32 64.0, %v3217_v62  ;;  %v1323_v37 = vpop.permute.xlu0 %1322 }
 0x1cb   : > { %v1343_v41 = vsel %vm1181_vm7, %v1323_v37, 0 }
 0x1cc   : > { %1507 = vmatpush.bf16.xpose.msra.mxu2 %v1485_v56  ;;  %v2319_v58 = vadd.f32 -64.0, %v3220_v4 }
 0x1cd   : > { %v1329_v45 = vpop.permute.xlu2 %1328 }
 0x1ce   : > { %v1352_v1 = vsel %vm1181_vm7, %v1329_v45, 0  ;;  %1072 = vperm.xlu1 %2569, %v2319_v58  }
 0x1cf   : > { %1365 = vmatpush.bf16.xpose.msra.mxu0 %v1355_v60 }
 0x1d4   : > { %1508 = vmatpush.bf16.xpose.msra.mxu2 %v1482_v55 }
 0x1d5   : > { %v3226_v63 = vpop.permute.xlu2 %1609 }
 0x1d6   : > { %1089 = vperm.xlu1 %2569, %v1067_v11   ;;  %v1612_v18 = vpop.permute.xlu1 %1611  ;;  %v1635_v61 = vsel %vm1181_vm7, %v3226_v63, 0 }
 0x1d7   : > { %v586_v2 = vpop.f32.mrf.mxu0  ;;  %v600_v21 = vpop.f32.mrf.mxu1  ;;  %1366 = vmatpush.bf16.xpose.msra.mxu0 %v1352_v1  ;;  %v1638_v38 = vsel %vm1181_vm7, %v1612_v18, 0 }
 0x1d8   : > { %v605_v8 = vmul.f32 0.125, %v586_v2  ;;  %v606_v57 = vmul.f32 0.125, %v600_v21 }
 0x1da   : > { %1006 = vmatmul.bf16.gmra.mxu0 %v3069_v10  ;;  %1055 = vmatmul.bf16.gmra.mxu1 %v3069_v10  ;;  %v1096_v14 = vpack.c.bf16 %v606_v57, %v605_v8 }
 0x1dc   : > { %1509 = vmatpush.bf16.xpose.msra.mxu2 %v1479_v7  ;;  %v1138_v22 = vunpack.c.l.b16 %v1096_v14  ;;  %v1448_v35 = vunpack.c.h.b16 %v1096_v14 }
 0x1dd   : > { %v1327_v19 = vpop.permute.xlu2 %1326 }
 0x1de   : > { %v1349_v10 = vsel %vm1181_vm7, %v1327_v19, 0  ;;  %v1606_v36 = vpop.permute.xlu1 %1605 }
 0x1df   : > { %v588_v5 = vpop.f32.mrf.mxu0  ;;  %v602_v9 = vpop.f32.mrf.mxu1  ;;  %1367 = vmatpush.bf16.xpose.msra.mxu0 %v1349_v10  ;;  %v1629_v63 = vsel %vm1181_vm7, %v1606_v36, 0 }
 0x1e0   : > { %v607_v26 = vmul.f32 0.125, %v588_v5  ;;  %v608_v17 = vmul.f32 0.125, %v602_v9 }
 0x1e2   : > { %v1097_v24 = vpack.c.bf16 %v608_v17, %v607_v26 }
 0x1e4   : > { %v1139_v25 = vunpack.c.l.b16 %v1097_v24  ;;  %v1449_v33 = vunpack.c.h.b16 %v1097_v24 }
 0x1e5   : > { %v1325_v32 = vpop.permute.xlu2 %1324 }
 0x1e6   : > { %v1140_v27 = vpack.c.b16 %v1139_v25, %v1138_v22  ;;  %v1346_v34 = vsel %vm1181_vm7, %v1325_v32, 0  ;;  %v1450_v3 = vpack.c.b16 %v1449_v33, %v1448_v35  ;;  %v1321_v52 = vpop.permute.xlu1 %1320 }
 0x1e7   : > { %v972_v15 = vpop.f32.mrf.mxu0  ;;  %v1021_v30 = vpop.f32.mrf.mxu1  ;;  %1368 = vmatpush.bf16.xpose.msra.mxu0 %v1346_v34  ;;  %v1340_v16 = vsel %vm1181_vm7, %v1321_v52, 0 }
 0x1e8   : > { %v1114_v31 = vpack.c.bf16 %v1021_v30, %v972_v15  ;;  %1318 = vrot.lane.b32.xlu2 %v1140_v27, %s2818_s25  ;;  %2323 = vmatmul.msk.bf16.vlgmr.msrb.gmra.mxu2 %vm1181_vm7, %v1140_v27 }
 0x1ea   : > { %v1272_v44 = vunpack.c.l.b16 %v1114_v31  ;;  %v1549_v46 = vunpack.c.h.b16 %v1114_v31 }
 0x1ed   : > { %v1604_v26 = vpop.permute.xlu2 %1603 }
 0x1ee   : > { %v1626_v17 = vsel %vm1181_vm7, %v1604_v26, 0  ;;  %v1600_v35 = vpop.permute.xlu1 %1599 }
 0x1ef   : > { %v974_v6 = vpop.f32.mrf.mxu0  ;;  %v1023_v39 = vpop.f32.mrf.mxu1  ;;  %1369 = vmatpush.bf16.xpose.msra.mxu0 %v1343_v41  ;;  %v1620_v36 = vsel %vm1181_vm7, %v1600_v35, 0 }
 0x1f0   : > { %v1115_v40 = vpack.c.bf16 %v1023_v39, %v974_v6  ;;  %1595 = vrot.lane.b32.xlu2 %v1450_v3, %s2818_s25 }
 0x1f2   : > { %v1273_v47 = vunpack.c.l.b16 %v1115_v40  ;;  %v1550_v51 = vunpack.c.h.b16 %v1115_v40 }
 0x1f4   : > { %v3239_v42 = vpack.c.b16 %v1273_v47, %v1272_v44  ;;  %v3241_v28 = vpack.c.b16 %v1550_v51, %v1549_v46 }
 0x1f7   : > { %v977_v48 = vpop.f32.mrf.mxu0  ;;  %v1026_v53 = vpop.f32.mrf.mxu1  ;;  %1370 = vmatpush.bf16.xpose.msra.mxu0 %v1340_v16 }
 0x1f8   : > { %v1116_v49 = vpack.c.bf16 %v1026_v53, %v977_v48  ;;  %2325 = vmatmul.msk.bf16.vlgmr.msra.gmra.mxu2 %vm1181_vm7, %v1450_v3  ;;  %1084 = vperm.xlu2 %2571, %v3220_v4   ;;  %v1632_v4 = vsel %vm1181_vm7, %v1608_v20, 0  ;;  %v1602_v20 = vpop.permute.xlu0 %1601 }
 0x1f9   : > { %v1623_v30 = vsel %vm1181_vm7, %v1602_v20, 0 }
 0x1fa   : > { %v1274_v13 = vunpack.c.l.b16 %v1116_v49  ;;  %v1551_v56 = vunpack.c.h.b16 %v1116_v49 }
 0x1ff   : > { %1640 = vmatpush.bf16.xpose.msrb.mxu0 %v1638_v38  ;;  %v979_v54 = vpop.f32.mrf.mxu0  ;;  %v1028_v29 = vpop.f32.mrf.mxu1 }
 0x200   : > { %v1117_v50 = vpack.c.bf16 %v1028_v29, %v979_v54  ;;  %v1598_v39 = vpop.permute.xlu0 %1597 }
 0x201   : > { %v1617_v51 = vsel %vm1181_vm7, %v1598_v39, 0 }
 0x202   : > { %v1275_v43 = vunpack.c.l.b16 %v1117_v50  ;;  %v1552_v59 = vunpack.c.h.b16 %v1117_v50 }
 0x204   : > { %v3249_v60 = vpack.c.b16 %v1275_v43, %v1274_v13  ;;  %v3251_v55 = vpack.c.b16 %v1552_v59, %v1551_v56 }
 0x207   : > { %1641 = vmatpush.bf16.xpose.msrb.mxu0 %v1635_v61  ;;  %v982_v45 = vpop.f32.mrf.mxu0  ;;  %v1031_v0 = vpop.f32.mrf.mxu1 }
 0x208   : > { %v1118_v58 = vpack.c.bf16 %v1031_v0, %v982_v45  ;;  %v1078_v35 = vpop.permute.xlu0 %1077 }
 0x20a   : > { %v1276_v7 = vunpack.c.l.b16 %v1118_v58  ;;  %v1553_v8 = vunpack.c.h.b16 %v1118_v58 }
 0x20f   : > { %1642 = vmatpush.bf16.xpose.msrb.mxu0 %v1632_v4  ;;  %v984_v2 = vpop.f32.mrf.mxu0  ;;  %v1033_v21 = vpop.f32.mrf.mxu1 }
 0x210   : > { %v1119_v1 = vpack.c.bf16 %v1033_v21, %v984_v2 }
 0x212   : > { %v1277_v57 = vunpack.c.l.b16 %v1119_v1  ;;  %v1554_v11 = vunpack.c.h.b16 %v1119_v1 }
 0x214   : > { %v3255_v12 = vpack.c.b16 %v1277_v57, %v1276_v7  ;;  %v3257_v5 = vpack.c.b16 %v1554_v11, %v1553_v8 }
 0x216   : > { %1414 = vrot.lane.b32.xlu2 %v3255_v12, %s2818_s25 }
 0x217   : > { %1643 = vmatpush.bf16.xpose.msrb.mxu0 %v1629_v63  ;;  %v987_v9 = vpop.f32.mrf.mxu0  ;;  %v1036_v14 = vpop.f32.mrf.mxu1 }
 0x218   : > { %v1120_v19 = vpack.c.bf16 %v1036_v14, %v987_v9 }
 0x21a   : > { %v1278_v22 = vunpack.c.l.b16 %v1120_v19  ;;  %v1555_v25 = vunpack.c.h.b16 %v1120_v19 }
 0x21f   : > { %1644 = vmatpush.bf16.xpose.msrb.mxu0 %v1626_v17  ;;  %v989_v18 = vpop.f32.mrf.mxu0  ;;  %v1038_v24 = vpop.f32.mrf.mxu1 }
 0x220   : > { %v1121_v10 = vpack.c.bf16 %v1038_v24, %v989_v18 }
 0x222   : > { %v1279_v27 = vunpack.c.l.b16 %v1121_v10  ;;  %v1556_v15 = vunpack.c.h.b16 %v1121_v10 }
 0x224   : > { %v3263_v31 = vpack.c.b16 %v1279_v27, %v1278_v22  ;;  %v3265_v32 = vpack.c.b16 %v1556_v15, %v1555_v25  ;;  %v1061_v15 = vlaneseq }
 0x226   : > { %1416 = vrot.lane.b32.xlu1 %v3263_v31, %s2818_s25 }
 0x227   : > { %1645 = vmatpush.bf16.xpose.msrb.mxu0 %v1623_v30  ;;  %v992_v33 = vpop.f32.mrf.mxu0  ;;  %v1041_v34 = vpop.f32.mrf.mxu1  ;;  %v1062_v30 = vand.u32 127, %v1061_v15 }
 0x228   : > { %v1122_v37 = vpack.c.bf16 %v1041_v34, %v992_v33 }
 0x22a   : > { %v1280_v41 = vunpack.c.l.b16 %v1122_v37  ;;  %v1557_v44 = vunpack.c.h.b16 %v1122_v37  ;;  %v2820_v37 = vmov 0.0  }
 0x22f   : > { %1646 = vmatpush.bf16.xpose.msrb.mxu0 %v1620_v36  ;;  %v994_v3 = vpop.f32.mrf.mxu0  ;;  %v1043_v6 = vpop.f32.mrf.mxu1  ;;  %v1063_v36 = vcvt.s32.f32 %v1062_v30 }
 0x230   : > { %v1123_v40 = vpack.c.bf16 %v1043_v6, %v994_v3 }
 0x231   : > { %vm1081_vm9 = vcmp.ge.f32.partialorder %v1063_v36, %v1078_v35 }
 0x232   : > { %v1281_v46 = vunpack.c.l.b16 %v1123_v40  ;;  %v1558_v47 = vunpack.c.h.b16 %v1123_v40 }
 0x234   : > { %v1292_v52 = vpack.c.b16 %v1281_v46, %v1280_v41  ;;  %v3271_v48 = vpack.c.b16 %v1558_v47, %v1557_v44 }
 0x236   : > { %1418 = vrot.lane.b32.xlu0 %v1292_v52, %s2818_s25 }
 0x237   : > { %1647 = vmatpush.bf16.xpose.msrb.mxu0 %v1617_v51  ;;  %v997_v53 = vpop.f32.mrf.mxu0  ;;  %v1046_v49 = vpop.f32.mrf.mxu1 }
 0x238   : > { %v1124_v38 = vpack.c.bf16 %v1046_v49, %v997_v53 }
 0x23a   : > { %v1282_v50 = vunpack.c.l.b16 %v1124_v38  ;;  %v1559_v13 = vunpack.c.h.b16 %v1124_v38 }
 0x23f   : > { %v999_v16 = vpop.f32.mrf.mxu0  ;;  %v1048_v54 = vpop.f32.mrf.mxu1 }
 0x240   : > { %v1125_v29 = vpack.c.bf16 %v1048_v54, %v999_v16  ;;  %v1073_v18 = vpop.permute.xlu1 %1072 }
 0x241   : > { %vm1080_vm12 = vcmp.ge.f32.partialorder %v1063_v36, %v1073_v18 }
 0x242   : > { %v1283_v56 = vunpack.c.l.b16 %v1125_v29  ;;  %v1560_v43 = vunpack.c.h.b16 %v1125_v29  ;;  %v1319_v59 = vpop.permute.xlu2 %1318 }
 0x243   : > { %2324 = vmatmul.msk.bf16.vlgmr.msra.gmra.mxu0 %vm1181_vm7, %v1319_v59 }
 0x244   : > { %v1293_v61 = vpack.c.b16 %v1283_v56, %v1282_v50  ;;  %v3275_v45 = vpack.c.b16 %v1560_v43, %v1559_v13 }
 0x246   : > { %1420 = vrot.lane.b32.xlu2 %v1293_v61, %s2818_s25 }
 0x247   : > { %v1002_v0 = vpop.f32.mrf.mxu0  ;;  %v1051_v4 = vpop.f32.mrf.mxu1 }
 0x248   : > { %v1126_v58 = vpack.c.bf16 %v1051_v4, %v1002_v0  ;;  %v1090_v33 = vpop.permute.xlu1 %1089 }
 0x249   : > { %vm1093_vm8 = vcmp.lt.f32.partialorder %v1063_v36, %v1090_v33 }
 0x24a   : > { %v1284_v7 = vunpack.c.l.b16 %v1126_v58  ;;  %v1596_v8 = vpop.permute.xlu2 %1595  ;;  %vm3282_vm10 = vmand %vm1081_vm9, %vm1093_vm8  ;;  %v1561_v40 = vunpack.c.h.b16 %v1126_v58 }
 0x24f   : > { %v1004_v2 = vpop.f32.mrf.mxu0  ;;  %v1053_v21 = vpop.f32.mrf.mxu1 }
 0x250   : > { %v1127_v1 = vpack.c.bf16 %v1053_v21, %v1004_v2 }
 0x252   : > { %v1285_v57 = vunpack.c.l.b16 %v1127_v1  ;;  %v1562_v39 = vunpack.c.h.b16 %v1127_v1  ;;  %v1085_v44 = vpop.permute.xlu2 %1084 }
 0x253   : > { %2326 = vmatmul.msk.bf16.vlgmr.msrb.gmra.mxu0 %vm1181_vm7, %v1596_v8  ;;  %vm1092_vm11 = vcmp.lt.f32.partialorder %v1063_v36, %v1085_v44 }
 0x254   : > { %v1294_v11 = vpack.c.b16 %v1285_v57, %v1284_v7  ;;  %v1571_v41 = vpack.c.b16 %v1562_v39, %v1561_v40  ;;  %vm3293_vm13 = vmand %vm1080_vm12, %vm1092_vm11 }
 0x256   : > { %1422 = vrot.lane.b32.xlu0 %v1294_v11, %s2818_s25 }
 0x257   : > { %v1007_v63 = vpop.f32.mrf.mxu0  ;;  %v1056_v9 = vpop.f32.mrf.mxu1 }
 0x258   : > { %v1128_v14 = vpack.c.bf16 %v1056_v9, %v1007_v63 }
 0x25a   : > { %v1286_v24 = vunpack.c.l.b16 %v1128_v14  ;;  %v1563_v10 = vunpack.c.h.b16 %v1128_v14 }
 0x25f   : > { %v1009_v26 = vpop.f32.mrf.mxu0  ;;  %v1058_v17 = vpop.f32.mrf.mxu1 }
 0x260   : > { %v1129_v19 = vpack.c.bf16 %v1058_v17, %v1009_v26 }
 0x262   : > { %v1287_v20 = vunpack.c.l.b16 %v1129_v19  ;;  %v1564_v22 = vunpack.c.h.b16 %v1129_v19 }
 0x264   : > { %v1572_v25 = vpack.c.b16 %v1564_v22, %v1563_v10  ;;  %v1295_v27 = vpack.c.b16 %v1287_v20, %v1286_v24 }
 0x266   : > { %1701 = vrot.lane.b32.xlu0 %v1572_v25, %s2818_s25  ;;  %1424 = vrot.lane.b32.xlu1 %v1295_v27, %s2818_s25 }
 0x267   : > { %1304 = vmatpush.bf16.msrb.mxu3 %v1295_v27 }
 0x26b   : > { %1305 = vmatpush.bf16.msrb.mxu3 %v1294_v11  ;;  %v1218_v34 = vpop.f32.mrf.mxu2 }
 0x26f   : > { %1306 = vmatpush.bf16.msrb.mxu3 %v1293_v61 }
 0x270   : > { %v1415_v56 = vpop.permute.xlu2 %1414 }
 0x273   : > { %1307 = vmatpush.bf16.msrb.mxu3 %v1292_v52  ;;  %v1220_v3 = vpop.f32.mrf.mxu2 }
 0x274   : > { %v1224_v6 = vsel %vm3282_vm10, %v1220_v3, -1e+30  ;;  %v2321_v3 = vsel %vm1130_vm14, 1.0, %v2820_v37 }
 0x275   : > { %1227 = vmax.xlane.f32.xlu2 %v1224_v6 }
 0x277   : > { %1308 = vmatpush.bf16.msrb.mxu3 %v3263_v31  ;;  %v1223_v31 = vsel %vm3293_vm13, %v1218_v34, -1e+30 }
 0x27b   : > { %1309 = vmatpush.bf16.msrb.mxu3 %v3255_v12  ;;  %v1511_v46 = vpop.f32.mrf.mxu2 }
 0x27c   : > { %v1516_v12 = vsel %vm3293_vm13, %v1511_v46, -1e+30 }
 0x27f   : > { %1310 = vmatpush.bf16.msrb.mxu3 %v3249_v60 }
 0x283   : > { %1311 = vmatpush.bf16.msrb.mxu3 %v3239_v42  ;;  %v1513_v51 = vpop.f32.mrf.mxu2 }
 0x284   : > { %v3306_v52 = vsel %vm3282_vm10, %v1513_v51, -1e+30 }
 0x287   : > { %1581 = vmatpush.bf16.msra.mxu3 %v1572_v25 }
 0x28b   : > { %1582 = vmatpush.bf16.msra.mxu3 %v1571_v41 }
 0x28f   : > { %1583 = vmatpush.bf16.msra.mxu3 %v3275_v45 }
 0x290   : > { %1518 = vmax.xlane.f32.xlu1 %v1516_v12  ;;  %1225 = vmax.xlane.f32.xlu0 %v1223_v31 }
 0x293   : > { %1584 = vmatpush.bf16.msra.mxu3 %v3271_v48 }
 0x297   : > { %1585 = vmatpush.bf16.msra.mxu3 %v3265_v32 }
 0x298   : > { %1520 = vmax.xlane.f32.xlu0 %v3306_v52  ;;  %v1417_v54 = vpop.permute.xlu1 %1416 }
 0x29b   : > { %1586 = vmatpush.bf16.msra.mxu3 %v3257_v5 }
 0x29f   : > { %1587 = vmatpush.bf16.msra.mxu3 %v3251_v55 }
 0x2a0   : > { %v1421_v61 = vpop.permute.xlu2 %1420 }
 0x2a3   : > { %1588 = vmatpush.bf16.msra.mxu3 %v3241_v28 }
 0x2a8   : > { %v1419_v13 = vpop.permute.xlu0 %1418 }
 0x2ac   : > { %1697 = vrot.lane.b32.xlu0 %v3275_v45, %s2818_s25 }
 0x2c0   : > { %v1372_v53 = vpop.f32.mrf.mxu0 }
 0x2c1   : > { %v1377_v49 = vsel %vm3293_vm13, %v1372_v53, -1e+30  ;;  %v2322_v53 = vsel %vm1131_vm15, 1.0, %v2820_v37  ;;  %v2462_v37 = vld [vmem:[#allocation8 + $0x18] sm:$0xff] }
 0x2c2   : > { %1379 = vmax.xlane.f32.xlu2 %v1377_v49 }
 0x2c8   : > { %v1374_v38 = vpop.f32.mrf.mxu0  ;;  %v1423_v59 = vpop.permute.xlu0 %1422 }
 0x2c9   : > { %v1378_v16 = vsel %vm3282_vm10, %v1374_v38, -1e+30 }
 0x2ca   : > { %1381 = vmax.xlane.f32.xlu1 %v1378_v16 }
 0x2d0   : > { %v1649_v29 = vpop.f32.mrf.mxu0 }
 0x2d1   : > { %v1654_v50 = vsel %vm3293_vm13, %v1649_v29, -1e+30 }
 0x2d2   : > { %1656 = vmax.xlane.f32.xlu2 %v1654_v50 }
 0x2d8   : > { %v1425_v43 = vpop.permute.xlu1 %1424  ;;  %v3325_v2 = vpop.permute.xlu0 %1701 }
 0x2d9   : > { %1434 = vmatpush.bf16.msra.mxu1 %v1425_v43  ;;  %v1651_v9 = vpop.f32.mrf.mxu0 }
 0x2dd   : > { %1435 = vmatpush.bf16.msra.mxu1 %v1423_v59 }
 0x2e1   : > { %1436 = vmatpush.bf16.msra.mxu1 %v1421_v61 }
 0x2e5   : > { %1437 = vmatpush.bf16.msra.mxu1 %v1419_v13 }
 0x2e8   : > { %v1228_v45 = vpop.xlane.xlu2 %1227 }
 0x2e9   : > { %v1230_v0 = vsub.f32 %v1224_v6, %v1228_v45  ;;  %1438 = vmatpush.bf16.msra.mxu1 %v1417_v54 }
 0x2ea   : > { %1699 = vrot.lane.b32.xlu2 %v1571_v41, %s2818_s25 }
 0x2eb   : > { %v1233_v4 = vmul.f32 1.442695, %v1230_v0 }
 0x2ed   : > { %2580 = vpow2.f32 %v1233_v4  ;;  %1439 = vmatpush.bf16.msra.mxu1 %v1415_v56 }
 0x2f2   : > { %1410 = vrot.lane.b32.xlu2 %v3239_v42, %s2818_s25  ;;  %v1655_v42 = vsel %vm3282_vm10, %v1651_v9, -1e+30 }
 0x2f3   : > { %v3322_v58 = vpop.eup %2580 }
 0x2f4   : > { %1237 = vadd.xlane.f32.xlu0 %v3322_v58 }
 0x303   : > { %v1226_v21 = vpop.xlane.xlu0 %1225  ;;  %v1519_v8 = vpop.xlane.xlu1 %1518 }
 0x304   : > { %v1229_v1 = vsub.f32 %v1223_v31, %v1226_v21  ;;  %v1522_v57 = vsub.f32 %v1516_v12, %v1519_v8 }
 0x306   : > { %v1231_v7 = vmul.f32 1.442695, %v1229_v1  ;;  %v1524_v63 = vmul.f32 1.442695, %v1522_v57 }
 0x308   : > { %2582 = vpow2.f32 %v1231_v7 }
 0x309   : > { %2584 = vpow2.f32 %v1524_v63 }
 0x30b   : > { %v1521_v30 = vpop.xlane.xlu0 %1520 }
 0x30e   : > { %v3327_v11 = vpop.eup %2582 }
 0x30f   : > { %1235 = vadd.xlane.f32.xlu1 %v3327_v11  ;;  %v3332_v14 = vpop.eup %2584 }
 0x317   : > { %1658 = vmax.xlane.f32.xlu1 %v1655_v42 }
 0x31b   : > { %1528 = vadd.xlane.f32.xlu2 %v3332_v14 }
 0x31e   : > { %v1698_v47 = vpop.permute.xlu0 %1697 }
 0x330   : > { %1412 = vrot.lane.b32.xlu1 %v3249_v60, %s2818_s25  ;;  %v1523_v60 = vsub.f32 %v3306_v52, %v1521_v30 }
 0x332   : > { %v1526_v34 = vmul.f32 1.442695, %v1523_v60 }
 0x335   : > { %v1380_v26 = vpop.xlane.xlu2 %1379 }
 0x336   : > { %v1383_v17 = vsub.f32 %v1377_v49, %v1380_v26 }
 0x338   : > { %v1385_v19 = vmul.f32 1.442695, %v1383_v17 }
 0x33a   : > { %2586 = vpow2.f32 %v1385_v19 }
 0x33d   : > { %v1382_v18 = vpop.xlane.xlu1 %1381 }
 0x33e   : > { %v1384_v24 = vsub.f32 %v1378_v16, %v1382_v18 }
 0x340   : > { %v3337_v10 = vpop.eup %2586  ;;  %v1387_v20 = vmul.f32 1.442695, %v1384_v24 }
 0x341   : > { %1389 = vadd.xlane.f32.xlu0 %v3337_v10 }
 0x342   : > { %2588 = vpow2.f32 %v1387_v20 }
 0x345   : > { %v1657_v22 = vpop.xlane.xlu2 %1656 }
 0x346   : > { %v1660_v25 = vsub.f32 %v1654_v50, %v1657_v22 }
 0x348   : > { %v3340_v27 = vpop.eup %2588  ;;  %v1662_v15 = vmul.f32 1.442695, %v1660_v25 }
 0x349   : > { %1391 = vadd.xlane.f32.xlu2 %v3340_v27 }
 0x34a   : > { %2590 = vpow2.f32 %v1662_v15 }
 0x34b   : > { %2592 = vpow2.f32 %v1526_v34 }
 0x34d   : > { %v1700_v12 = vpop.permute.xlu2 %1699 }
 0x350   : > { %v3344_v33 = vpop.eup %2590 }
 0x351   : > { %1666 = vadd.xlane.f32.xlu0 %v3344_v33  ;;  %v3347_v35 = vpop.eup %2592 }
 0x355   : > { %v1411_v62 = vpop.permute.xlu2 %1410 }
 0x35a   : > { %1530 = vadd.xlane.f32.xlu1 %v3347_v35 }
 0x367   : > { %v1238_v31 = vpop.xlane.xlu0 %1237 }
 0x382   : > { %v1236_v36 = vpop.xlane.xlu1 %1235 }
 0x383   : > { %2594 = vrcp.f32 %v1236_v36  ;;  %v2465_v36 = vld [vmem:[#allocation8 + $0x30] sm:$0xff] }
 0x389   : > { %v2595_v6 = vpop.eup %2594 }
 0x38a   : > { %v1659_v39 = vpop.xlane.xlu1 %1658  ;;  %v1241_v40 = vmul.f32 %v2595_v6, %v2321_v3  ;;  %v2461_v6 = vld [vmem:[#allocation8 + $0x10] sm:$0xff] }
 0x38b   : > { %v1661_v41 = vsub.f32 %v1655_v42, %v1659_v39  ;;  %v2460_v39 = vld [vmem:[#allocation8 + $0x8] sm:$0xff] }
 0x38c   : > { %1245 = vperm.xlu1 %2569, %v1241_v40   ;;  %v2469_v40 = vld [vmem:[#allocation8 + $0x50] sm:$0xff] }
 0x38d   : > { %v1664_v44 = vmul.f32 1.442695, %v1661_v41  ;;  %v2468_v41 = vld [vmem:[#allocation8 + $0x48] sm:$0xff] }
 0x38e   : > { %v1529_v38 = vpop.xlane.xlu2 %1528 }
 0x38f   : > { %2596 = vpow2.f32 %v1664_v44  ;;  %v2467_v44 = vld [vmem:[#allocation8 + $0x40] sm:$0xff] }
 0x390   : > { %2598 = vrcp.f32 %v1238_v31 }
 0x395   : > { %v3351_v46 = vpop.eup %2596 }
 0x396   : > { %1668 = vadd.xlane.f32.xlu2 %v3351_v46  ;;  %v2599_v52 = vpop.eup %2598 }
 0x397   : > { %v1242_v49 = vmul.f32 %v2599_v52, %v2322_v53 }
 0x3a2   : > { %v1413_v51 = vpop.permute.xlu1 %1412 }
 0x3a3   : > { %1440 = vmatpush.bf16.msra.mxu1 %v1413_v51 }
 0x3a7   : > { %1441 = vmatpush.bf16.msra.mxu1 %v1411_v62 }
 0x3ab   : > { %1711 = vmatpush.bf16.msrb.mxu1 %v3325_v2 }
 0x3ae   : > { %1250 = vperm.xlu2 %2571, %v1242_v49  }
 0x3af   : > { %1712 = vmatpush.bf16.msrb.mxu1 %v1700_v12  ;;  %v2473_v12 = vld [vmem:[#allocation8 + $0x70] sm:$0xff] }
 0x3b3   : > { %1713 = vmatpush.bf16.msrb.mxu1 %v1698_v47  ;;  %v2474_v47 = vld [vmem:[#allocation8 + $0x78] sm:$0xff] }
 0x3b4   : > { %v1390_v16 = vpop.xlane.xlu0 %1389  ;;  %1920 = vmatpush.bf16.msrb.mxu2 %v2474_v47 }
 0x3b5   : > { %2600 = vrcp.f32 %v1390_v16 }
 0x3b6   : > { %1691 = vrot.lane.b32.xlu2 %v3257_v5, %s2818_s25 }
 0x3b8   : > { %1921 = vmatpush.bf16.msrb.mxu2 %v2473_v12 }
 0x3bb   : > { %v2601_v54 = vpop.eup %2600 }
 0x3bc   : > { %v1392_v29 = vpop.xlane.xlu2 %1391  ;;  %v1395_v50 = vmul.f32 %v2601_v54, %v2321_v3  ;;  %v2472_v54 = vld [vmem:[#allocation8 + $0x68] sm:$0xff] }
 0x3bd   : > { %2602 = vrcp.f32 %v1392_v29  ;;  %1922 = vmatpush.bf16.msrb.mxu2 %v2472_v54  ;;  %v2471_v29 = vld [vmem:[#allocation8 + $0x60] sm:$0xff] }
 0x3be   : > { %1399 = vperm.xlu0 %2570, %v1395_v50   ;;  %2604 = vrcp.f32 %v1529_v38 }
 0x3c1   : > { %1923 = vmatpush.bf16.msrb.mxu2 %v2471_v29 }
 0x3c3   : > { %v2603_v23 = vpop.eup %2602 }
 0x3c4   : > { %v1396_v13 = vmul.f32 %v2603_v23, %v2322_v53  ;;  %v1667_v56 = vpop.xlane.xlu0 %1666  ;;  %v2605_v5 = vpop.eup %2604 }
 0x3c5   : > { %2606 = vrcp.f32 %v1667_v56  ;;  %v1534_v61 = vmul.f32 %v2605_v5, %v2321_v3 }
 0x3c6   : > { %1404 = vperm.xlu1 %2569, %v1396_v13   ;;  %1695 = vrot.lane.b32.xlu0 %v3271_v48, %s2818_s25 }
 0x3cb   : > { %v2607_v59 = vpop.eup %2606 }
 0x3cc   : > { %v1672_v45 = vmul.f32 %v2607_v59, %v2321_v3  ;;  %v2470_v3 = vld [vmem:[#allocation8 + $0x58] sm:$0xff] }
 0x3cd   : > { %v1531_v43 = vpop.xlane.xlu1 %1530 }
 0x3ce   : > { %1693 = vrot.lane.b32.xlu1 %v3265_v32, %s2818_s25  ;;  %1689 = vrot.lane.b32.xlu0 %v3251_v55, %s2818_s25  ;;  %2608 = vrcp.f32 %v1531_v43 }
 0x3d4   : > { %v2609_v0 = vpop.eup %2608 }
 0x3d5   : > { %v1535_v4 = vmul.f32 %v2609_v0, %v2322_v53 }
 0x3d6   : > { %1538 = vperm.xlu1 %2569, %v1534_v61   ;;  %1676 = vperm.xlu0 %2570, %v1672_v45  }
 0x3d7   : > { %1543 = vperm.xlu2 %2571, %v1535_v4  }
 0x3df   : > { %1687 = vrot.lane.b32.xlu2 %v3241_v28, %s2818_s25  ;;  %s405_s25 = scalar_lea.vmem [#allocation10], %s2090_s16 }
 0x3e0   : > { %s1947_s14 = sshll.u32 %s405_s25, 4  ;;  %s1948_s14 = int_to_ptr.vmem [resolvable:$true] %s1947_s14 }
 0x3fe   : > { %v1246_v2 = vpop.permute.xlu1 %1245 }
 0x3ff   : > { %v1253_v55 = vmul.f32 %v3327_v11, %v1246_v2 }
 0x409   : > { %v1669_v48 = vpop.xlane.xlu2 %1668 }
 0x40a   : > { %2610 = vrcp.f32 %v1669_v48 }
 0x410   : > { %v2611_v32 = vpop.eup %2610 }
 0x411   : > { %v1251_v21 = vpop.permute.xlu2 %1250  ;;  %v1673_v1 = vmul.f32 %v2611_v32, %v2322_v53 }
 0x412   : > { %v1254_v7 = vmul.f32 %v3322_v58, %v1251_v21 }
 0x413   : > { %1681 = vperm.xlu1 %2569, %v1673_v1  }
 0x414   : > { %v1255_v8 = vpack.c.bf16 %v1254_v7, %v1253_v55 }
 0x416   : > { %1312 = vmatmul.bf16.vlgmr.msrb.gmra.mxu3 %v1255_v8 }
 0x419   : > { %v1692_v26 = vpop.permute.xlu2 %1691 }
 0x430   : > { %v1400_v57 = vpop.permute.xlu0 %1399 }
 0x431   : > { %v1407_v42 = vmul.f32 %v3337_v10, %v1400_v57  ;;  %v1544_v18 = vpop.permute.xlu2 %1543  ;;  %v2466_v10 = vld [vmem:[#allocation8 + $0x38] sm:$0xff] }
 0x432   : > { %v1547_v24 = vmul.f32 %v3347_v35, %v1544_v18  ;;  %1775 = vmatpush.bf16.msrb.mxu3 %v2466_v10  ;;  %v2464_v35 = vld [vmem:[#allocation8 + $0x28] sm:$0xff] }
 0x436   : > { %1776 = vmatpush.bf16.msrb.mxu3 %v2465_v36 }
 0x438   : > { %v1405_v63 = vpop.permute.xlu1 %1404  ;;  %v1696_v9 = vpop.permute.xlu0 %1695 }
 0x439   : > { %v1408_v28 = vmul.f32 %v3340_v27, %v1405_v63  ;;  %1714 = vmatpush.bf16.msrb.mxu1 %v1696_v9  ;;  %v1688_v25 = vpop.permute.xlu2 %1687 }
 0x43a   : > { %1777 = vmatpush.bf16.msrb.mxu3 %v2464_v35 }
 0x43b   : > { %v1409_v17 = vpack.c.bf16 %v1408_v28, %v1407_v42 }
 0x43d   : > { %1442 = vmatmul.bf16.vlgmr.msra.gmra.mxu1 %v1409_v17 }
 0x440   : > { %v1694_v19 = vpop.permute.xlu1 %1693  ;;  %v1690_v11 = vpop.permute.xlu0 %1689 }
 0x441   : > { %1715 = vmatpush.bf16.msrb.mxu1 %v1694_v19 }
 0x445   : > { %1716 = vmatpush.bf16.msrb.mxu1 %v1692_v26 }
 0x448   : > { %v1539_v58 = vpop.permute.xlu1 %1538  ;;  %v1677_v27 = vpop.permute.xlu0 %1676 }
 0x449   : > { %v1546_v20 = vmul.f32 %v3332_v14, %v1539_v58  ;;  %1717 = vmatpush.bf16.msrb.mxu1 %v1690_v11  ;;  %v1684_v30 = vmul.f32 %v3344_v33, %v1677_v27  ;;  %v2463_v14 = vld [vmem:[#allocation8 + $0x20] sm:$0xff] }
 0x44a   : > { %1778 = vmatpush.bf16.msrb.mxu3 %v2463_v14  ;;  %v2459_v33 = vld [vmem:[#allocation8] sm:$0xff] }
 0x44b   : > { %v1548_v22 = vpack.c.bf16 %v1547_v24, %v1546_v20 }
 0x44d   : > { %1589 = vmatmul.bf16.vlgmr.msra.gmra.mxu3 %v1548_v22  ;;  %1718 = vmatpush.bf16.msrb.mxu1 %v1688_v25 }
 0x44e   : > { %1816 = vmatpush.bf16.msra.mxu3 %v2462_v37 }
 0x451   : > { %1867 = vmatpush.bf16.msra.mxu1 %v2470_v3 }
 0x452   : > { %1817 = vmatpush.bf16.msra.mxu3 %v2461_v6 }
 0x455   : > { %1868 = vmatpush.bf16.msra.mxu1 %v2469_v40 }
 0x456   : > { %1818 = vmatpush.bf16.msra.mxu3 %v2460_v39 }
 0x459   : > { %1869 = vmatpush.bf16.msra.mxu1 %v2468_v41 }
 0x45a   : > { %1819 = vmatpush.bf16.msra.mxu3 %v2459_v33 }
 0x45d   : > { %1870 = vmatpush.bf16.msra.mxu1 %v2467_v44 }
 0x485   : > { %v1682_v15 = vpop.permute.xlu1 %1681 }
 0x486   : > { %v1685_v60 = vmul.f32 %v3351_v46, %v1682_v15 }
 0x488   : > { %v1686_v34 = vpack.c.bf16 %v1685_v60, %v1684_v30 }
 0x48a   : > { %1719 = vmatmul.bf16.vlgmr.msrb.gmra.mxu1 %v1686_v34 }
 0x499   : > { %v1313_v31 = vpop.f32.mrf.mxu3 }
 0x4a1   : > { %v1315_v52 = vpop.f32.mrf.mxu3 }
 0x4a2   : > { %v1725_v49 = vpack.c.bf16 %v1315_v52, %v1313_v31 }
 0x4ba   : > { %v1443_v46 = vpop.f32.mrf.mxu1 }
 0x4c2   : > { %v1445_v51 = vpop.f32.mrf.mxu1 }
 0x4c3   : > { %v1734_v62 = vpack.c.bf16 %v1445_v51, %v1443_v46 }
 0x4c5   : > { %2343 = vmatmul.msk.bf16.vlgmr.msrb.gmra.mxu3 %vm1181_vm7, %v1734_v62 }
 0x4d0   : > { %v1590_v53 = vpop.f32.mrf.mxu3 }
 0x4d5   : > { %2360 = vmatmul.msk.bf16.vlgmr.msra.gmra.mxu3 %vm1181_vm7, %v1725_v49 }
 0x4d8   : > { %v1592_v38 = vpop.f32.mrf.mxu3 }
 0x4d9   : > { %v1826_v16 = vpack.c.bf16 %v1592_v38, %v1590_v53 }
 0x4db   : > { %2377 = vmatmul.msk.bf16.vlgmr.msra.gmra.mxu1 %vm1181_vm7, %v1826_v16 }
 0x507   : > { %v1720_v50 = vpop.f32.mrf.mxu1 }
 0x50f   : > { %v1722_v23 = vpop.f32.mrf.mxu1 }
 0x510   : > { %v1879_v13 = vpack.c.bf16 %v1722_v23, %v1720_v50 }
 0x512   : > { %2394 = vmatmul.msk.bf16.vlgmr.msrb.gmra.mxu2 %vm1181_vm7, %v1879_v13 }
 0x548   : > { %v1780_v56 = vpop.f32.mrf.mxu3 }
 0x550   : > { %v1782_v43 = vpop.f32.mrf.mxu3 }
 0x558   : > { %v1821_v5 = vpop.f32.mrf.mxu3  ;;  %v1872_v61 = vpop.f32.mrf.mxu1 }
 0x559   : > { %v1822_v59 = vadd.f32 %v1821_v5, %v1780_v56 }
 0x55b   : > { %v1877_v45 = vadd.f32 %v1872_v61, %v1822_v59 }
 0x560   : > { %v1823_v0 = vpop.f32.mrf.mxu3  ;;  %v1874_v32 = vpop.f32.mrf.mxu1 }
 0x561   : > { %v1824_v2 = vadd.f32 %v1823_v0, %v1782_v43 }
 0x563   : > { %v1878_v21 = vadd.f32 %v1874_v32, %v1824_v2 }
 0x595   : > { %v1925_v4 = vpop.f32.mrf.mxu2 }
 0x596   : > { %v1930_v48 = vadd.f32 %v1925_v4, %v1877_v45 }
 0x598   : > { %1932 = vst [vmem:[%s405_s25] sm:$0xff] %v1930_v48 }
 0x59d   : > { %v1927_v1 = vpop.f32.mrf.mxu2 }
 0x59e   : > { %v1931_v55 = vadd.f32 %v1927_v1, %v1878_v21 }
 0x5a0   : > { %1933 = vst [vmem:[%s405_s25 + $0x8] sm:$0xff] %v1931_v55 }
 0x5a1   : > { %2759 = shalt.err (!%p2756_p12)
}
 0x5a2   : > { %s2821_s13 = smov 128   ;;  %s2822_s11 = smov 8  }
 0x5a3   : > { %2494 = dma.vmem_to_hbm [thread:$0]  (%p2953_p3), %s1948_s14, 256, %s1950_s20, %s1935_s9, %s2821_s13, %s2821_s13, %s2822_s11  }
 0x5a4 PF: > { %s1964_s21 = sand.u32 1, %s2794_s27   ;;  %p3439_p13 = scmp.ge.s32.totalorder %s2806_s30, 2 }
 0x5a5   : > { %s1965_s23 = scalar_lea.sflag [#allocation4], %s1964_s21 }
 0x5a6   : > { %p2511_p0 = pnand %p3439_p13, %p2903_p6 }
 0x5a8   : > { %p2512_p5 = pneg %p2511_p0 }
 0x5aa   : > { %2789 = dma.done.wait (%p2512_p5), %s1965_s23, 256  }
 0x5ab   : > { %2791 = vsyncadd (%p2512_p5), %s1965_s23, 4294967040  ;;  %p23_p7 = scmp.ge.s32.totalorder %s2940_s22, 4   ;;  %s3440_s27 = smov %s2798_s28 }
 0x5ac   : > { %s3441_s28 = smov %s2802_s29  ;;  %s3442_s29 = smov %s2949_s26 }
 0x5ad   : > { %s3443_s30 = smov %s2940_s22  ;;  %25 = sbr.rel (!%p23_p7) target bundleno = 10 (0xa), region = 118 }
 0x5b2   :  { %1971 = vsyncpa [#allocation3], 1 }
 0x5b3   :  { %1973 = vsyncpa [#allocation3 + $0x1], 1 }
 0x5b4   :  { %1974 = vsyncpa [#allocation6], 1 }
 0x5b5   :  { %1975 = vsyncpa [#allocation9], 1 }
 0x5b6   :  { %1976 = vsyncpa [#allocation4], 1 }
 0x5b7   :  { %1978 = vsyncpa [#allocation4 + $0x1], 1 }

</bundles_post_ra>
